<compile_context>
chip_gen: v7x
topology: tpu7x:2x2x1
jax: 0.10.0
libtpu: 0.0.40
codegen_flags: <defaults>
</compile_context>

<pallas_src>
import functools

import jax
import jax.numpy as jnp
from jax.experimental import pallas as pl
from jax.experimental.pallas import tpu as pltpu


def _coupling_kernel(x_ref,
                     w1_ref, b1_ref,      # fused layer-1   (F,  2H) / (1, 2H)
                     w2_ref, b2_ref,      # fused layer-2   (2H, 2F) / (1, 2F)
                     y_ref, scale_ref,
                     *, feat_dim):
    F = feat_dim
    x = x_ref[...].astype(jnp.float32)
    TM = x.shape[0]

    # checkerboard mask over the feature axis: even columns -> identity.
    col = jax.lax.broadcasted_iota(jnp.int32, (TM, F), 1)
    even = (col % 2) == 0

    # x1 = x * mask (odd columns zeroed) — feeds both sub-nets.
    x1 = jnp.where(even, x, 0.0)

    # Fused layer 1 for both nets: (TM, F) @ (F, 2H) -> (TM, 2H), +bias, ReLU.
    h = jnp.dot(x1.astype(jnp.bfloat16), w1_ref[...],
                preferred_element_type=jnp.float32)
    h = jnp.maximum(h + b1_ref[...].astype(jnp.float32), 0.0)

    # Fused (block-diagonal) layer 2: (TM, 2H) @ (2H, 2F) -> (TM, 2F), +bias.
    #   columns [:F]  -> scale pre-activation,  columns [F:] -> translate.
    out2 = jnp.dot(h.astype(jnp.bfloat16), w2_ref[...],
                   preferred_element_type=jnp.float32)
    out2 = out2 + b2_ref[...].astype(jnp.float32)

    scale = jnp.tanh(out2[:, :F])
    translate = out2[:, F:]

    # y = x1 + x2*exp(scale) + translate
    #   = x * where(even, 1, exp(scale)) + translate     (translate unmasked,
    #     exactly as in the PyTorch forward).
    y = x * jnp.where(even, 1.0, jnp.exp(scale)) + translate

    y_ref[...] = y.astype(y_ref.dtype)
    scale_ref[...] = scale.astype(scale_ref.dtype)


def _pick_tm(B):
    """Largest batch tile (<=512) that divides B; fall back to whole batch."""
    for tm in (512, 256, 128, 64, 32, 16, 8):
        if B % tm == 0:
            return tm
    return B  # block equals full array dims -> always legal


def checkerboard_coupling_forward(x, params):
    """Forward pass; returns (y1 + y2, scale), matching the PyTorch module."""
    B, F = x.shape
    H = params["w1s"].shape[1]

    # Fuse the two layer-1 weights/biases -> one (F, 2H) matmul.
    w1 = jnp.concatenate([params["w1s"], params["w1t"]], axis=1).astype(jnp.bfloat16)
    b1 = jnp.concatenate([params["b1s"], params["b1t"]], axis=1).astype(jnp.float32)

    # Fuse the two layer-2 weights into one block-diagonal (2H, 2F) matmul.
    w2 = jnp.zeros((2 * H, 2 * F), jnp.float32)
    w2 = w2.at[:H, :F].set(params["w2s"]).at[H:, F:].set(params["w2t"])
    w2 = w2.astype(jnp.bfloat16)
    b2 = jnp.concatenate([params["b2s"], params["b2t"]], axis=1).astype(jnp.float32)

    tm = _pick_tm(B)
    grid = (B // tm,)

    row_spec = lambda shape: pl.BlockSpec(shape, lambda i: (i, 0))   # batch-tiled
    res_spec = lambda shape: pl.BlockSpec(shape, lambda i: (0, 0))   # grid-resident

    kernel = functools.partial(_coupling_kernel, feat_dim=F)

    flops = 2 * B * (F * 2 * H) + 2 * B * (2 * H * 2 * F)           # layer1 + layer2
    bytes_accessed = (x.nbytes
                      + B * F * x.dtype.itemsize                    # y
                      + B * F * 4                                   # scale (f32)
                      + w1.nbytes + b1.nbytes + w2.nbytes + b2.nbytes)

    return pl.pallas_call(
        kernel,
        grid=grid,
        in_specs=[
            row_spec((tm, F)),                                       # x
            res_spec((F, 2 * H)), res_spec((1, 2 * H)),              # fused layer 1
            res_spec((2 * H, 2 * F)), res_spec((1, 2 * F)),          # fused layer 2
        ],
        out_specs=(row_spec((tm, F)), row_spec((tm, F))),
        out_shape=(jax.ShapeDtypeStruct((B, F), x.dtype),
                   jax.ShapeDtypeStruct((B, F), jnp.float32)),
        compiler_params=pltpu.CompilerParams(
            dimension_semantics=("parallel",)),
        cost_estimate=pl.CostEstimate(
            flops=flops,
            transcendentals=2 * B * F,                               # exp + tanh
            bytes_accessed=bytes_accessed),
    )(x, w1, b1, w2, b2)


def init_params(key, input_dim, hidden_dim):
    """Deterministic parameter init (PyTorch-Linear-like uniform fan-in bounds)."""
    F = input_dim // 2
    H = hidden_dim
    ks = jax.random.split(key, 8)

    def uni(k, shape, fan_in):
        bound = 1.0 / jnp.sqrt(fan_in)
        return jax.random.uniform(k, shape, jnp.float32, -bound, bound)

    return {
        # weights stored (in, out); biases kept 2D (1, out) for TPU layout
        "w1s": uni(ks[0], (F, H), F), "b1s": uni(ks[1], (1, H), F),
        "w2s": uni(ks[2], (H, F), H), "b2s": uni(ks[3], (1, F), H),
        "w1t": uni(ks[4], (F, H), F), "b1t": uni(ks[5], (1, H), F),
        "w2t": uni(ks[6], (H, F), H), "b2t": uni(ks[7], (1, F), H),
    }


def _reference_forward(x, p):
    """Plain-JAX reference mirroring the PyTorch forward (bf16 matmul inputs,
    f32 accumulation, f32 elementwise) for a tight comparison."""
    bf = lambda a: a.astype(jnp.bfloat16)
    col = jnp.arange(x.shape[1])[None, :]
    even = (col % 2) == 0
    x1 = jnp.where(even, x, 0.0)

    h_s = jnp.maximum(
        jnp.dot(bf(x1), bf(p["w1s"]), preferred_element_type=jnp.float32)
        + p["b1s"], 0.0)
    scale = jnp.tanh(
        jnp.dot(bf(h_s), bf(p["w2s"]), preferred_element_type=jnp.float32)
        + p["b2s"])
    h_t = jnp.maximum(
        jnp.dot(bf(x1), bf(p["w1t"]), preferred_element_type=jnp.float32)
        + p["b1t"], 0.0)
    translate = (
        jnp.dot(bf(h_t), bf(p["w2t"]), preferred_element_type=jnp.float32)
        + p["b2t"])

    y = x * jnp.where(even, 1.0, jnp.exp(scale)) + translate
    return y, scale


if __name__ == "__main__":
    key = jax.random.PRNGKey(0)
    k_x, k_p = jax.random.split(key)

    input_dim = 32       # module constructor arg
    hidden_dim = 32
    B = 1024             # batch: gives a 2-step grid with TM=512
    F = input_dim // 2   # forward only runs when x's feature dim == input_dim // 2

    x = jax.random.normal(k_x, (B, F), dtype=jnp.float32)
    params = init_params(k_p, input_dim, hidden_dim)

    fwd = jax.jit(checkerboard_coupling_forward)
    y, scale = fwd(x, params)
    jax.block_until_ready((y, scale))

    y_ref, scale_ref = _reference_forward(x, params)
    assert jnp.allclose(y, y_ref, atol=2e-2, rtol=2e-2), \
        float(jnp.max(jnp.abs(y - y_ref)))
    assert jnp.allclose(scale, scale_ref, atol=2e-2, rtol=2e-2), \
        float(jnp.max(jnp.abs(scale - scale_ref)))

    print("KERNEL_OK")
</pallas_src>

<mosaic_0001>
module attributes {stable_mosaic.version = 11 : i64} {
  func.func @_coupling_kernel(%arg0: i32, %arg1: memref<512x16xf32, #tpu.memory_space<vmem>>, %arg2: memref<16x64xbf16, #tpu.memory_space<vmem>>, %arg3: memref<1x64xf32, #tpu.memory_space<vmem>>, %arg4: memref<64x32xbf16, #tpu.memory_space<vmem>>, %arg5: memref<1x32xf32, #tpu.memory_space<vmem>>, %arg6: memref<512x16xf32, #tpu.memory_space<vmem>>, %arg7: memref<512x16xf32, #tpu.memory_space<vmem>>) attributes {dimension_semantics = [#tpu.dimension_semantics<parallel>], iteration_bounds = array<i64: 2>, scalar_prefetch = 0 : i64, scratch_operands = 0 : i64, tpu.core_type = #tpu.core_type<tc>, window_params = [{transform_indices = @transform_0, window_bounds = array<i64: 512, 16>}, {pipeline_mode = #tpu.pipeline_mode<synchronous>, transform_indices = @transform_1, window_bounds = array<i64: 16, 64>}, {pipeline_mode = #tpu.pipeline_mode<synchronous>, transform_indices = @transform_2, window_bounds = array<i64: 1, 64>}, {pipeline_mode = #tpu.pipeline_mode<synchronous>, transform_indices = @transform_3, window_bounds = array<i64: 64, 32>}, {pipeline_mode = #tpu.pipeline_mode<synchronous>, transform_indices = @transform_4, window_bounds = array<i64: 1, 32>}, {transform_indices = @transform_5, window_bounds = array<i64: 512, 16>}, {transform_indices = @transform_6, window_bounds = array<i64: 512, 16>}]} {
    %c0 = arith.constant 0 : index
    %c0_0 = arith.constant 0 : index
    %0 = vector.load %arg1[%c0, %c0_0] : memref<512x16xf32, #tpu.memory_space<vmem>>, vector<512x16xf32>
    %1 = tpu.iota {dimensions = array<i32: 1>} : vector<512x16xi32>
    %c2_i32 = arith.constant 2 : i32
    %c0_i32 = arith.constant 0 : i32
    %2 = arith.cmpi eq, %c2_i32, %c0_i32 : i32
    %c1_i32 = arith.constant 1 : i32
    %3 = arith.select %2, %c1_i32, %c2_i32 : i32
    %4 = vector.broadcast %3 : i32 to vector<512x16xi32>
    %5 = arith.remsi %1, %4 : vector<512x16xi32>
    %c0_i32_1 = arith.constant 0 : i32
    %6 = vector.broadcast %c0_i32_1 : i32 to vector<512x16xi32>
    %7 = arith.cmpi ne, %5, %6 : vector<512x16xi32>
    %c0_i32_2 = arith.constant 0 : i32
    %8 = vector.broadcast %c0_i32_2 : i32 to vector<512x16xi32>
    %9 = arith.cmpi slt, %5, %8 : vector<512x16xi32>
    %c0_i32_3 = arith.constant 0 : i32
    %10 = arith.cmpi slt, %3, %c0_i32_3 : i32
    %11 = vector.broadcast %10 : i1 to vector<512x16xi1>
    %12 = vector.broadcast %11 : vector<512x16xi1> to vector<512x16xi1>
    %13 = arith.xori %9, %12 : vector<512x16xi1>
    %14 = arith.andi %13, %7 : vector<512x16xi1>
    %15 = vector.broadcast %3 : i32 to vector<512x16xi32>
    %16 = arith.addi %5, %15 : vector<512x16xi32>
    %17 = arith.select %14, %16, %5 : vector<512x16xi1>, vector<512x16xi32>
    %c0_i32_4 = arith.constant 0 : i32
    %18 = vector.broadcast %c0_i32_4 : i32 to vector<512x16xi32>
    %19 = arith.cmpi eq, %17, %18 : vector<512x16xi32>
    %cst = arith.constant 0.000000e+00 : f32
    %20 = vector.broadcast %cst : f32 to vector<512x16xf32>
    %21 = arith.select %19, %0, %20 : vector<512x16xi1>, vector<512x16xf32>
    %22 = arith.truncf %21 : vector<512x16xf32> to vector<512x16xbf16>
    %c0_5 = arith.constant 0 : index
    %c0_6 = arith.constant 0 : index
    %23 = vector.load %arg2[%c0_5, %c0_6] : memref<16x64xbf16, #tpu.memory_space<vmem>>, vector<16x64xbf16>
    %cst_7 = arith.constant dense<0.000000e+00> : vector<512x64xf32>
    %24 = tpu.matmul %22, %23, %cst_7 {dimension_numbers = #tpu.dot_dimension_numbers<[1], [0], [0], [1], [0, 0, 1, 1], [], []>} : vector<512x16xbf16>, vector<16x64xbf16>, vector<512x64xf32> -> vector<512x64xf32>
    %c0_8 = arith.constant 0 : index
    %c0_9 = arith.constant 0 : index
    %25 = vector.load %arg3[%c0_8, %c0_9] : memref<1x64xf32, #tpu.memory_space<vmem>>, vector<1x64xf32>
    %26 = vector.broadcast %25 : vector<1x64xf32> to vector<512x64xf32>
    %27 = arith.addf %24, %26 : vector<512x64xf32>
    %cst_10 = arith.constant 0.000000e+00 : f32
    %28 = vector.broadcast %cst_10 : f32 to vector<512x64xf32>
    %29 = arith.maximumf %27, %28 : vector<512x64xf32>
    %30 = arith.truncf %29 : vector<512x64xf32> to vector<512x64xbf16>
    %c0_11 = arith.constant 0 : index
    %c0_12 = arith.constant 0 : index
    %31 = vector.load %arg4[%c0_11, %c0_12] : memref<64x32xbf16, #tpu.memory_space<vmem>>, vector<64x32xbf16>
    %cst_13 = arith.constant dense<0.000000e+00> : vector<512x32xf32>
    %32 = tpu.matmul %30, %31, %cst_13 {dimension_numbers = #tpu.dot_dimension_numbers<[1], [0], [0], [1], [0, 0, 1, 1], [], []>} : vector<512x64xbf16>, vector<64x32xbf16>, vector<512x32xf32> -> vector<512x32xf32>
    %c0_14 = arith.constant 0 : index
    %c0_15 = arith.constant 0 : index
    %33 = vector.load %arg5[%c0_14, %c0_15] : memref<1x32xf32, #tpu.memory_space<vmem>>, vector<1x32xf32>
    %34 = vector.broadcast %33 : vector<1x32xf32> to vector<512x32xf32>
    %35 = arith.addf %32, %34 : vector<512x32xf32>
    %36 = vector.extract_strided_slice %35 {offsets = [0, 0], sizes = [512, 16], strides = [1, 1]} : vector<512x32xf32> to vector<512x16xf32>
    %37 = math.tanh %36 : vector<512x16xf32>
    %38 = vector.extract_strided_slice %35 {offsets = [0, 16], sizes = [512, 16], strides = [1, 1]} : vector<512x32xf32> to vector<512x16xf32>
    %39 = math.exp %37 : vector<512x16xf32>
    %cst_16 = arith.constant 1.000000e+00 : f32
    %40 = vector.broadcast %cst_16 : f32 to vector<512x16xf32>
    %41 = arith.select %19, %40, %39 : vector<512x16xi1>, vector<512x16xf32>
    %42 = arith.mulf %0, %41 : vector<512x16xf32>
    %43 = arith.addf %42, %38 : vector<512x16xf32>
    %c0_17 = arith.constant 0 : index
    %c0_18 = arith.constant 0 : index
    %44 = vector.load %arg6[%c0_17, %c0_18] : memref<512x16xf32, #tpu.memory_space<vmem>>, vector<512x16xf32>
    tpu.vector_store %arg6[%c0_17, %c0_18], %43 {strides = array<i32>} : memref<512x16xf32, #tpu.memory_space<vmem>>, vector<512x16xf32>,
    %c0_19 = arith.constant 0 : index
    %c0_20 = arith.constant 0 : index
    %45 = vector.load %arg7[%c0_19, %c0_20] : memref<512x16xf32, #tpu.memory_space<vmem>>, vector<512x16xf32>
    tpu.vector_store %arg7[%c0_19, %c0_20], %37 {strides = array<i32>} : memref<512x16xf32, #tpu.memory_space<vmem>>, vector<512x16xf32>,
    return
  }
  func.func @transform_0(%arg0: i32) -> (i32, i32) {
    %c0_i32 = arith.constant 0 : i32
    %c0_i32_0 = arith.constant 0 : i32
    return %arg0, %c0_i32 : i32, i32
  }
  func.func @transform_1(%arg0: i32) -> (i32, i32) {
    %c0_i32 = arith.constant 0 : i32
    %c0_i32_0 = arith.constant 0 : i32
    %c0_i32_1 = arith.constant 0 : i32
    return %c0_i32, %c0_i32_0 : i32, i32
  }
  func.func @transform_2(%arg0: i32) -> (i32, i32) {
    %c0_i32 = arith.constant 0 : i32
    %c0_i32_0 = arith.constant 0 : i32
    %c0_i32_1 = arith.constant 0 : i32
    return %c0_i32, %c0_i32_0 : i32, i32
  }
  func.func @transform_3(%arg0: i32) -> (i32, i32) {
    %c0_i32 = arith.constant 0 : i32
    %c0_i32_0 = arith.constant 0 : i32
    %c0_i32_1 = arith.constant 0 : i32
    return %c0_i32, %c0_i32_0 : i32, i32
  }
  func.func @transform_4(%arg0: i32) -> (i32, i32) {
    %c0_i32 = arith.constant 0 : i32
    %c0_i32_0 = arith.constant 0 : i32
    %c0_i32_1 = arith.constant 0 : i32
    return %c0_i32, %c0_i32_0 : i32, i32
  }
  func.func @transform_5(%arg0: i32) -> (i32, i32) {
    %c0_i32 = arith.constant 0 : i32
    %c0_i32_0 = arith.constant 0 : i32
    return %arg0, %c0_i32 : i32, i32
  }
  func.func @transform_6(%arg0: i32) -> (i32, i32) {
    %c0_i32 = arith.constant 0 : i32
    %c0_i32_0 = arith.constant 0 : i32
    return %arg0, %c0_i32 : i32, i32
  }
}

</mosaic_0001>

<bundles_post_ra>
// kernel: checkerboard_coupling_forward.1
= control target key start
LH: loop header
LB: loop body
LE: loop exit
PB: predicated region body
PF: predicated region fallthrough
CT: control target
= control target key end

     0   :  { %s2894_s21 = smov 0   ;;  %s4115_s0 = inlined_call_operand.vmem [shape: f32[1024,16], index: 0, kind: input, shape index: {}]   ;;  %s4116_s1 = inlined_call_operand.vmem [shape: bf16[16,64], index: 1, kind: input, shape index: {}]   ;;  %s4117_s2 = inlined_call_operand.vmem [shape: f32[1,64], index: 2, kind: input, shape index: {}]   ;;  %s4118_s3 = inlined_call_operand.vmem [shape: bf16[64,32], index: 3, kind: input, shape index: {}]   ;;  %s4119_s4 = inlined_call_operand.vmem [shape: f32[1,32], index: 4, kind: input, shape index: {}]   ;;  %s4120_s5 = inlined_call_operand.vmem [shape: f32[1024,16], index: 5, kind: output, shape index: {0}]   ;;  %s4121_s6 = inlined_call_operand.vmem [shape: f32[1024,16], index: 6, kind: output, shape index: {1}]  }
   0x1 LB: > { %s2225_s22 = sadd.s32 4294967295, %s2856_s21   ;;  %p2229_p0 = scmp.ge.s32.totalorder %s2856_s21, 1  ;;  %s2856_s21 = sphi %s2894_s21, %s17_s21  }
   0x2   : > { %p216_p1 = scmp.lt.s32.totalorder %s2856_s21, 3 }
   0x4   : > { %p217_p2 = pnand %p2229_p0, %p216_p1 }
   0x5   : > { %v2525_v0 = vld [vmem:[%s4116_s1] sm:$0xff] (!%p217_p2)   ;;  %s2230_s25 = sshll.u32 (!%p217_p2), %s2225_s22, 6  ;;  %v334_v1 = vlaneseq (!%p217_p2)  ;;  %v2527_v5 = vld [vmem:[%s4118_s3 + $0x8] sm:$0xff] (!%p217_p2)   ;;  %vm460_vm1 = vcmask (!%p217_p2), 130048   ;;  %vm981_vm2 = vcmask (!%p217_p2), 523264   ;;  %s2858_s18 = smov (!%p217_p2), 112  }
   0x6   : > { %220 = sbr.rel (%p217_p2) target bundleno = 703 (0x2bf), region = 40  ;;  %p252_p3 = scmp.lt.s32.totalorder (!%p217_p2), %s2230_s25, 127  ;;  %2378 = vmatprep.subr.bf16.mxu0 (!%p217_p2), %v2525_v0  ;;  %v2526_v4 = vld [vmem:[%s4118_s3] sm:$0xff] (!%p217_p2)  }
   0x7   : > { %v335_v2 = vand.u32 (!%p217_p2), 127, %v334_v1  ;;  %2379 = vmatpush3.bf16.msra.mxu0 (!%p217_p2), %v2525_v0  ;;  %2444 = vmatprep.subr.bf16.mxu1 (!%p217_p2), %v2526_v4 }
   0x8   : > { %2445 = vmatpush3.bf16.msra.mxu1 (!%p217_p2), %v2526_v4 }
   0x9   : > { %v340_v3 = vand.u32 (!%p217_p2), 1, %v335_v2  ;;  %2446 = vmatprep.subr.bf16.mxu1 (!%p217_p2), %v2527_v5 }
   0xb   : > { %vm2919_vm0 = vcmp.eq.s32.totalorder (!%p217_p2), %v340_v3, 0 }
   0xc   : > { %2447 = vmatpush3.bf16.msra.mxu1 (!%p217_p2), %v2527_v5 }
   0xd   : > { %s4125_s25 = smov (!%p252_p3, %s2230_s25), 127 }
   0xe   : > { %s2911_s30 = sshll.u32 %s4125_s25, 3 }
   0xf   : > { %s2917_s9 = scalar_lea.vmem %s4115_s0, %s2911_s30  ;;  %s3273_s22 = scalar_lea.vmem %s4121_s6, %s2911_s30 }
  0x10   : > { %v270_v7 = vld [vmem:[%s2917_s9] sm:$0xff]  ;;  %v271_v8 = vld [vmem:[%s2917_s9 + $0x8] sm:$0xff]  ;;  %v272_v9 = vld [vmem:[%s2917_s9 + $0x10] sm:$0xff]  ;;  %s3664_s25 = scalar_lea.vmem %s4120_s5, %s2911_s30 }
  0x11   : > { %v349_v10 = vsel %vm2919_vm0, %v270_v7, 0.0  ;;  %v350_v11 = vsel %vm2919_vm0, %v271_v8, 0.0  ;;  %v273_v12 = vld [vmem:[%s2917_s9 + $0x18] sm:$0xff]  ;;  %v351_v13 = vsel %vm2919_vm0, %v272_v9, 0.0  ;;  %v274_v14 = vld [vmem:[%s2917_s9 + $0x20] sm:$0xff]  ;;  %v275_v15 = vld [vmem:[%s2917_s9 + $0x28] sm:$0xff] }
  0x12   : > { %v413_v16 = vpack.c.bf16 %v350_v11, %v349_v10  ;;  %v352_v17 = vsel %vm2919_vm0, %v273_v12, 0.0  ;;  %v353_v18 = vsel %vm2919_vm0, %v274_v14, 0.0  ;;  %v354_v19 = vsel %vm2919_vm0, %v275_v15, 0.0  ;;  %v276_v22 = vld [vmem:[%s2917_s9 + $0x30] sm:$0xff]  ;;  %v277_v23 = vld [vmem:[%s2917_s9 + $0x38] sm:$0xff]  ;;  %v278_v24 = vld [vmem:[%s2917_s9 + $0x40] sm:$0xff] }
  0x13   : > { %v414_v20 = vpack.c.bf16 %v352_v17, %v351_v13  ;;  %v415_v21 = vpack.c.bf16 %v354_v19, %v353_v18  ;;  %v279_v25 = vld [vmem:[%s2917_s9 + $0x48] sm:$0xff]  ;;  %v355_v26 = vsel %vm2919_vm0, %v276_v22, 0.0  ;;  %v356_v27 = vsel %vm2919_vm0, %v277_v23, 0.0  ;;  %v280_v32 = vld [vmem:[%s2917_s9 + $0x50] sm:$0xff]  ;;  %v281_v33 = vld [vmem:[%s2917_s9 + $0x58] sm:$0xff] }
  0x14   : > { %2380 = vmatprep.mubr.msk.bf16.mxu0 %vm460_vm1, %v413_v16  ;;  %v357_v28 = vsel %vm2919_vm0, %v278_v24, 0.0  ;;  %v358_v29 = vsel %vm2919_vm0, %v279_v25, 0.0  ;;  %v416_v30 = vpack.c.bf16 %v356_v27, %v355_v26  ;;  %v282_v34 = vld [vmem:[%s2917_s9 + $0x60] sm:$0xff]  ;;  %v283_v35 = vld [vmem:[%s2917_s9 + $0x68] sm:$0xff]  ;;  %v359_v36 = vsel %vm2919_vm0, %v280_v32, 0.0  ;;  %v284_v42 = vld [vmem:[%s2917_s9 + $0x70] sm:$0xff] }
  0x15   : > { %2381 = vmatmul.mubr.msk.bf16.vlgmr.msra.gmra.mrb[0].mxu0 %vm460_vm1, %v414_v20  ;;  %v417_v31 = vpack.c.bf16 %v358_v29, %v357_v28  ;;  %v360_v37 = vsel %vm2919_vm0, %v281_v33, 0.0  ;;  %v361_v38 = vsel %vm2919_vm0, %v282_v34, 0.0  ;;  %v362_v39 = vsel %vm2919_vm0, %v283_v35, 0.0  ;;  %v285_v43 = vld [vmem:[%s2917_s9 + $0x78] sm:$0xff]  ;;  %v286_v44 = vld [vmem:[%s2917_s9 + $0x80] sm:$0xff]  ;;  %v287_v45 = vld [vmem:[%s2917_s9 + $0x88] sm:$0xff] }
  0x16   : > { %2384 = vmatprep.mubr.msk.bf16.mxu0 %vm460_vm1, %v415_v21  ;;  %v418_v40 = vpack.c.bf16 %v360_v37, %v359_v36  ;;  %v419_v41 = vpack.c.bf16 %v362_v39, %v361_v38  ;;  %v363_v46 = vsel %vm2919_vm0, %v284_v42, 0.0  ;;  %v364_v47 = vsel %vm2919_vm0, %v285_v43, 0.0  ;;  %v288_v52 = vld [vmem:[%s2917_s9 + $0x90] sm:$0xff]  ;;  %v289_v53 = vld [vmem:[%s2917_s9 + $0x98] sm:$0xff]  ;;  %v290_v54 = vld [vmem:[%s2917_s9 + $0xa0] sm:$0xff] }
  0x17   : > { %v365_v48 = vsel %vm2919_vm0, %v286_v44, 0.0  ;;  %v366_v49 = vsel %vm2919_vm0, %v287_v45, 0.0  ;;  %v420_v50 = vpack.c.bf16 %v364_v47, %v363_v46  ;;  %v291_v55 = vld [vmem:[%s2917_s9 + $0xa8] sm:$0xff]  ;;  %v367_v56 = vsel %vm2919_vm0, %v288_v52, 0.0  ;;  %v292_v62 = vld [vmem:[%s2917_s9 + $0xb0] sm:$0xff]  ;;  %v293_v63 = vld [vmem:[%s2917_s9 + $0xb8] sm:$0xff] }
  0x18   : > { %v421_v51 = vpack.c.bf16 %v366_v49, %v365_v48  ;;  %v368_v57 = vsel %vm2919_vm0, %v289_v53, 0.0  ;;  %v369_v58 = vsel %vm2919_vm0, %v290_v54, 0.0  ;;  %v370_v59 = vsel %vm2919_vm0, %v291_v55, 0.0  ;;  %v294_v0 = vld [vmem:[%s2917_s9 + $0xc0] sm:$0xff]  ;;  %v295_v1 = vld [vmem:[%s2917_s9 + $0xc8] sm:$0xff]  ;;  %v296_v9 = vld [vmem:[%s2917_s9 + $0xd0] sm:$0xff] }
  0x19   : > { %v422_v60 = vpack.c.bf16 %v368_v57, %v367_v56  ;;  %v423_v61 = vpack.c.bf16 %v370_v59, %v369_v58  ;;  %v371_v2 = vsel %vm2919_vm0, %v292_v62, 0.0  ;;  %v372_v3 = vsel %vm2919_vm0, %v293_v63, 0.0  ;;  %v297_v10 = vld [vmem:[%s2917_s9 + $0xd8] sm:$0xff]  ;;  %v298_v11 = vld [vmem:[%s2917_s9 + $0xe0] sm:$0xff]  ;;  %v299_v12 = vld [vmem:[%s2917_s9 + $0xe8] sm:$0xff] }
  0x1a   : > { %v373_v4 = vsel %vm2919_vm0, %v294_v0, 0.0  ;;  %v374_v5 = vsel %vm2919_vm0, %v295_v1, 0.0  ;;  %v424_v7 = vpack.c.bf16 %v372_v3, %v371_v2  ;;  %v375_v13 = vsel %vm2919_vm0, %v296_v9, 0.0  ;;  %v300_v19 = vld [vmem:[%s2917_s9 + $0xf0] sm:$0xff]  ;;  %v301_v20 = vld [vmem:[%s2917_s9 + $0xf8] sm:$0xff]  ;;  %v302_v21 = vld [vmem:[%s2917_s9 + $0x100] sm:$0xff] }
  0x1b   : > { %v425_v8 = vpack.c.bf16 %v374_v5, %v373_v4  ;;  %v376_v14 = vsel %vm2919_vm0, %v297_v10, 0.0  ;;  %v377_v15 = vsel %vm2919_vm0, %v298_v11, 0.0  ;;  %v378_v16 = vsel %vm2919_vm0, %v299_v12, 0.0  ;;  %v303_v22 = vld [vmem:[%s2917_s9 + $0x108] sm:$0xff]  ;;  %v304_v29 = vld [vmem:[%s2917_s9 + $0x110] sm:$0xff]  ;;  %v322_v9 = vld [vmem:[%s2917_s9 + $0x1a0] sm:$0xff] }
  0x1c   : > { %v426_v17 = vpack.c.bf16 %v376_v14, %v375_v13  ;;  %v427_v18 = vpack.c.bf16 %v378_v16, %v377_v15  ;;  %v379_v23 = vsel %vm2919_vm0, %v300_v19, 0.0  ;;  %v380_v24 = vsel %vm2919_vm0, %v301_v20, 0.0  ;;  %v307_v32 = vld [vmem:[%s2917_s9 + $0x128] sm:$0xff]  ;;  %v308_v39 = vld [vmem:[%s2917_s9 + $0x130] sm:$0xff]  ;;  %v2529_v11 = vld [vmem:[%s4118_s3 + $0x18] sm:$0xff]  }
  0x1d   : > { %2385 = vmatmul.mubr.msk.bf16.gmra.mrb[4].mxu0 %vm460_vm1, %v416_v30  ;;  %v381_v25 = vsel %vm2919_vm0, %v302_v21, 0.0  ;;  %v382_v26 = vsel %vm2919_vm0, %v303_v22, 0.0  ;;  %v428_v27 = vpack.c.bf16 %v380_v24, %v379_v23  ;;  %v305_v30 = vld [vmem:[%s2917_s9 + $0x118] sm:$0xff]  ;;  %v383_v33 = vsel %vm2919_vm0, %v304_v29, 0.0  ;;  %v311_v42 = vld [vmem:[%s2917_s9 + $0x148] sm:$0xff]  ;;  %v312_v49 = vld [vmem:[%s2917_s9 + $0x150] sm:$0xff] }
  0x1e   : > { %2388 = vmatprep.mubr.msk.bf16.mxu0 %vm460_vm1, %v417_v31  ;;  %v429_v28 = vpack.c.bf16 %v382_v26, %v381_v25  ;;  %v306_v31 = vld [vmem:[%s2917_s9 + $0x120] sm:$0xff]  ;;  %v384_v34 = vsel %vm2919_vm0, %v305_v30, 0.0  ;;  %v386_v36 = vsel %vm2919_vm0, %v307_v32, 0.0  ;;  %v387_v43 = vsel %vm2919_vm0, %v308_v39, 0.0  ;;  %v315_v52 = vld [vmem:[%s2917_s9 + $0x168] sm:$0xff]  ;;  %v316_v59 = vld [vmem:[%s2917_s9 + $0x170] sm:$0xff] }
  0x1f   : > { %v385_v35 = vsel %vm2919_vm0, %v306_v31, 0.0  ;;  %v430_v37 = vpack.c.bf16 %v384_v34, %v383_v33  ;;  %v390_v46 = vsel %vm2919_vm0, %v311_v42, 0.0  ;;  %v391_v53 = vsel %vm2919_vm0, %v312_v49, 0.0  ;;  %v319_v62 = vld [vmem:[%s2917_s9 + $0x188] sm:$0xff]  ;;  %v2528_v4 = vld [vmem:[%s4118_s3 + $0x10] sm:$0xff]   ;;  %v325_v19 = vld [vmem:[%s2917_s9 + $0x1b8] sm:$0xff] }
  0x20   : > { %v431_v38 = vpack.c.bf16 %v386_v36, %v385_v35  ;;  %v394_v56 = vsel %vm2919_vm0, %v315_v52, 0.0  ;;  %v395_v63 = vsel %vm2919_vm0, %v316_v59, 0.0  ;;  %v398_v2 = vsel %vm2919_vm0, %v319_v62, 0.0  ;;  %2448 = vmatprep.subr.bf16.mxu1 %v2528_v4  ;;  %v323_v10 = vld [vmem:[%s2917_s9 + $0x1a8] sm:$0xff]  ;;  %v326_v20 = vld [vmem:[%s2917_s9 + $0x1c0] sm:$0xff]  ;;  %v329_v29 = vld [vmem:[%s2917_s9 + $0x1d8] sm:$0xff] }
  0x21   : > { %2449 = vmatpush3.bf16.msra.mxu1 %v2528_v4  ;;  %v401_v14 = vsel %vm2919_vm0, %v322_v9, 0.0  ;;  %v402_v15 = vsel %vm2919_vm0, %v323_v10, 0.0  ;;  %v327_v21 = vld [vmem:[%s2917_s9 + $0x1c8] sm:$0xff]  ;;  %v404_v23 = vsel %vm2919_vm0, %v325_v19, 0.0  ;;  %v405_v24 = vsel %vm2919_vm0, %v326_v20, 0.0  ;;  %v330_v30 = vld [vmem:[%s2917_s9 + $0x1e0] sm:$0xff] }
  0x22   : > { %2450 = vmatprep.subr.bf16.mxu1 %v2529_v11  ;;  %v406_v25 = vsel %vm2919_vm0, %v327_v21, 0.0  ;;  %v331_v31 = vld [vmem:[%s2917_s9 + $0x1e8] sm:$0xff]  ;;  %v408_v33 = vsel %vm2919_vm0, %v329_v29, 0.0  ;;  %v409_v34 = vsel %vm2919_vm0, %v330_v30, 0.0  ;;  %v333_v39 = vld [vmem:[%s2917_s9 + $0x1f8] sm:$0xff] }
  0x23   : > { %v410_v35 = vsel %vm2919_vm0, %v331_v31, 0.0 }
  0x25   : > { %2389 = vmatmul.mubr.msk.bf16.gmra.mrb[8].mxu0 %vm460_vm1, %v418_v40  ;;  %v309_v40 = vld [vmem:[%s2917_s9 + $0x138] sm:$0xff]  ;;  %2451 = vmatpush3.bf16.msra.mxu1 %v2529_v11 }
  0x26   : > { %2392 = vmatprep.mubr.msk.bf16.mxu0 %vm460_vm1, %v419_v41  ;;  %v310_v41 = vld [vmem:[%s2917_s9 + $0x140] sm:$0xff]  ;;  %v388_v44 = vsel %vm2919_vm0, %v309_v40, 0.0 }
  0x27   : > { %v389_v45 = vsel %vm2919_vm0, %v310_v41, 0.0  ;;  %v432_v47 = vpack.c.bf16 %v388_v44, %v387_v43  ;;  %v412_v41 = vsel %vm2919_vm0, %v333_v39, 0.0  ;;  %v3156_v43 = vld [vmem:[%s4117_s2] ss:$0 sm:$0xff] }
  0x28   : > { %v433_v48 = vpack.c.bf16 %v390_v46, %v389_v45 }
  0x2d   : > { %2393 = vmatmul.mubr.msk.bf16.gmra.mrb[12].mxu0 %vm460_vm1, %v420_v50  ;;  %v313_v50 = vld [vmem:[%s2917_s9 + $0x158] sm:$0xff] }
  0x2e   : > { %2396 = vmatprep.mubr.msk.bf16.mxu0 %vm460_vm1, %v421_v51  ;;  %v314_v51 = vld [vmem:[%s2917_s9 + $0x160] sm:$0xff]  ;;  %v392_v54 = vsel %vm2919_vm0, %v313_v50, 0.0 }
  0x2f   : > { %v393_v55 = vsel %vm2919_vm0, %v314_v51, 0.0  ;;  %v434_v57 = vpack.c.bf16 %v392_v54, %v391_v53 }
  0x30   : > { %v435_v58 = vpack.c.bf16 %v394_v56, %v393_v55 }
  0x35   : > { %2397 = vmatmul.mubr.msk.bf16.gmra.mrb[16].mxu0 %vm460_vm1, %v422_v60  ;;  %v317_v60 = vld [vmem:[%s2917_s9 + $0x178] sm:$0xff] }
  0x36   : > { %2400 = vmatprep.mubr.msk.bf16.mxu0 %vm460_vm1, %v423_v61  ;;  %v318_v61 = vld [vmem:[%s2917_s9 + $0x180] sm:$0xff]  ;;  %v396_v0 = vsel %vm2919_vm0, %v317_v60, 0.0 }
  0x37   : > { %v397_v1 = vsel %vm2919_vm0, %v318_v61, 0.0  ;;  %v436_v3 = vpack.c.bf16 %v396_v0, %v395_v63 }
  0x38   : > { %v437_v5 = vpack.c.bf16 %v398_v2, %v397_v1 }
  0x3d   : > { %2401 = vmatmul.mubr.msk.bf16.gmra.mrb[20].mxu0 %vm460_vm1, %v424_v7  ;;  %v320_v7 = vld [vmem:[%s2917_s9 + $0x190] sm:$0xff] }
  0x3e   : > { %2404 = vmatprep.mubr.msk.bf16.mxu0 %vm460_vm1, %v425_v8  ;;  %v321_v8 = vld [vmem:[%s2917_s9 + $0x198] sm:$0xff]  ;;  %v399_v12 = vsel %vm2919_vm0, %v320_v7, 0.0 }
  0x3f   : > { %v400_v13 = vsel %vm2919_vm0, %v321_v8, 0.0 }
  0x40   : > { %v438_v16 = vpack.c.bf16 %v400_v13, %v399_v12 }
  0x45   : > { %2405 = vmatmul.mubr.msk.bf16.gmra.mrb[24].mxu0 %vm460_vm1, %v426_v17  ;;  %v439_v17 = vpack.c.bf16 %v402_v15, %v401_v14 }
  0x46   : > { %2408 = vmatprep.mubr.msk.bf16.mxu0 %vm460_vm1, %v427_v18  ;;  %v324_v18 = vld [vmem:[%s2917_s9 + $0x1b0] sm:$0xff] }
  0x47   : > { %v403_v22 = vsel %vm2919_vm0, %v324_v18, 0.0 }
  0x48   : > { %v440_v26 = vpack.c.bf16 %v404_v23, %v403_v22 }
  0x4d   : > { %2409 = vmatmul.mubr.msk.bf16.gmra.mrb[28].mxu0 %vm460_vm1, %v428_v27  ;;  %v441_v27 = vpack.c.bf16 %v406_v25, %v405_v24 }
  0x4e   : > { %2412 = vmatprep.mubr.msk.bf16.mxu0 %vm460_vm1, %v429_v28  ;;  %v328_v28 = vld [vmem:[%s2917_s9 + $0x1d0] sm:$0xff] }
  0x4f   : > { %v407_v32 = vsel %vm2919_vm0, %v328_v28, 0.0 }
  0x50   : > { %v442_v36 = vpack.c.bf16 %v408_v33, %v407_v32 }
  0x55   : > { %2413 = vmatmul.mubr.msk.bf16.gmra.mrb[32].mxu0 %vm460_vm1, %v430_v37  ;;  %v443_v37 = vpack.c.bf16 %v410_v35, %v409_v34 }
  0x56   : > { %2416 = vmatprep.mubr.msk.bf16.mxu0 %vm460_vm1, %v431_v38  ;;  %v332_v38 = vld [vmem:[%s2917_s9 + $0x1f0] sm:$0xff] }
  0x57   : > { %v411_v40 = vsel %vm2919_vm0, %v332_v38, 0.0 }
  0x58   : > { %v444_v42 = vpack.c.bf16 %v412_v41, %v411_v40 }
  0x5d   : > { %2417 = vmatmul.mubr.msk.bf16.gmra.mrb[36].mxu0 %vm460_vm1, %v432_v47 }
  0x5e   : > { %2420 = vmatprep.mubr.msk.bf16.mxu0 %vm460_vm1, %v433_v48 }
  0x65   : > { %2421 = vmatmul.mubr.msk.bf16.gmra.mrb[40].mxu0 %vm460_vm1, %v434_v57 }
  0x66   : > { %2424 = vmatprep.mubr.msk.bf16.mxu0 %vm460_vm1, %v435_v58 }
  0x6d   : > { %2425 = vmatmul.mubr.msk.bf16.gmra.mrb[44].mxu0 %vm460_vm1, %v436_v3 }
  0x6e   : > { %2428 = vmatprep.mubr.msk.bf16.mxu0 %vm460_vm1, %v437_v5 }
  0x75   : > { %2429 = vmatmul.mubr.msk.bf16.gmra.mrb[48].mxu0 %vm460_vm1, %v438_v16 }
  0x76   : > { %2432 = vmatprep.mubr.msk.bf16.mxu0 %vm460_vm1, %v439_v17 }
  0x7d   : > { %2433 = vmatmul.mubr.msk.bf16.gmra.mrb[52].mxu0 %vm460_vm1, %v440_v26 }
  0x7e   : > { %2436 = vmatprep.mubr.msk.bf16.mxu0 %vm460_vm1, %v441_v27 }
  0x85   : > { %2437 = vmatmul.mubr.msk.bf16.gmra.mrb[56].mxu0 %vm460_vm1, %v442_v36 }
  0x86   : > { %2440 = vmatprep.mubr.msk.bf16.mxu0 %vm460_vm1, %v443_v37 }
  0x8d   : > { %2441 = vmatmul.mubr.msk.bf16.gmra.mrb[60].mxu0 %vm460_vm1, %v444_v42 }
  0xe8   : > { %v2382_v44 = vpop.f32.mrb[0].mxu0 }
  0xe9   : > { %v600_v45 = vadd.f32 %v2382_v44, %v3156_v43  ;;  %v591_v46 = vpop.f32.mrb[1].mxu0 }
  0xea   : > { %v592_v47 = vadd.f32 %v3156_v43, %v591_v46  ;;  %v2383_v48 = vpop.f32.mrb[2].mxu0 }
  0xeb   : > { %v603_v49 = vadd.f32 %v2383_v48, %v3156_v43  ;;  %v594_v50 = vpop.f32.mrb[3].mxu0  ;;  %v848_v52 = vmax.f32 %v600_v45, 0.0 }
  0xec   : > { %v595_v51 = vadd.f32 %v3156_v43, %v594_v50  ;;  %v846_v54 = vmax.f32 %v592_v47, 0.0 }
  0xed   : > { %v849_v53 = vmax.f32 %v603_v49, 0.0 }
  0xee   : > { %v847_v55 = vmax.f32 %v595_v51, 0.0 }
  0xef   : > { %v911_v56 = vpack.c.bf16 %v849_v53, %v848_v52 }
  0xf0   : > { %v2386_v57 = vpop.f32.mrb[4].mxu0  ;;  %v910_v58 = vpack.c.bf16 %v847_v55, %v846_v54 }
  0xf1   : > { %v616_v59 = vadd.f32 %v2386_v57, %v3156_v43  ;;  %v607_v60 = vpop.f32.mrb[5].mxu0 }
  0xf2   : > { %v608_v61 = vadd.f32 %v3156_v43, %v607_v60  ;;  %v2387_v62 = vpop.f32.mrb[6].mxu0  ;;  %2452 = vmatprep.mubr.msk.bf16.mxu1 %vm981_vm2, %v910_v58 }
  0xf3   : > { %v619_v63 = vadd.f32 %v2387_v62, %v3156_v43  ;;  %v610_v0 = vpop.f32.mrb[7].mxu0  ;;  %2453 = vmatmul.mubr.msk.bf16.vlgmr.msra.gmra.mrb[0].mxu1 %vm981_vm2, %v911_v56  ;;  %v852_v2 = vmax.f32 %v616_v59, 0.0 }
  0xf4   : > { %v611_v1 = vadd.f32 %v3156_v43, %v610_v0  ;;  %v850_v4 = vmax.f32 %v608_v61, 0.0 }
  0xf5   : > { %v853_v3 = vmax.f32 %v619_v63, 0.0 }
  0xf6   : > { %v851_v5 = vmax.f32 %v611_v1, 0.0 }
  0xf7   : > { %v913_v7 = vpack.c.bf16 %v853_v3, %v852_v2 }
  0xf8   : > { %v912_v8 = vpack.c.bf16 %v851_v5, %v850_v4  ;;  %v2390_v9 = vpop.f32.mrb[8].mxu0 }
  0xf9   : > { %v632_v10 = vadd.f32 %v2390_v9, %v3156_v43  ;;  %v623_v11 = vpop.f32.mrb[9].mxu0 }
  0xfa   : > { %v624_v12 = vadd.f32 %v3156_v43, %v623_v11  ;;  %v2391_v13 = vpop.f32.mrb[10].mxu0  ;;  %2456 = vmatprep.mubr.msk.bf16.mxu1 %vm981_vm2, %v912_v8 }
  0xfb   : > { %v635_v14 = vadd.f32 %v2391_v13, %v3156_v43  ;;  %v626_v15 = vpop.f32.mrb[11].mxu0  ;;  %2457 = vmatmul.mubr.msk.bf16.gmra.mrb[4].mxu1 %vm981_vm2, %v913_v7  ;;  %v856_v17 = vmax.f32 %v632_v10, 0.0 }
  0xfc   : > { %v627_v16 = vadd.f32 %v3156_v43, %v626_v15  ;;  %v854_v19 = vmax.f32 %v624_v12, 0.0 }
  0xfd   : > { %v857_v18 = vmax.f32 %v635_v14, 0.0 }
  0xfe   : > { %v855_v20 = vmax.f32 %v627_v16, 0.0 }
  0xff   : > { %v915_v21 = vpack.c.bf16 %v857_v18, %v856_v17 }
 0x100   : > { %v914_v22 = vpack.c.bf16 %v855_v20, %v854_v19  ;;  %v2394_v23 = vpop.f32.mrb[12].mxu0 }
 0x101   : > { %v648_v24 = vadd.f32 %v2394_v23, %v3156_v43  ;;  %v639_v25 = vpop.f32.mrb[13].mxu0 }
 0x102   : > { %v640_v26 = vadd.f32 %v3156_v43, %v639_v25  ;;  %v2395_v27 = vpop.f32.mrb[14].mxu0  ;;  %2460 = vmatprep.mubr.msk.bf16.mxu1 %vm981_vm2, %v914_v22 }
 0x103   : > { %v651_v28 = vadd.f32 %v2395_v27, %v3156_v43  ;;  %v642_v29 = vpop.f32.mrb[15].mxu0  ;;  %2461 = vmatmul.mubr.msk.bf16.gmra.mrb[8].mxu1 %vm981_vm2, %v915_v21  ;;  %v860_v31 = vmax.f32 %v648_v24, 0.0 }
 0x104   : > { %v643_v30 = vadd.f32 %v3156_v43, %v642_v29  ;;  %v858_v33 = vmax.f32 %v640_v26, 0.0 }
 0x105   : > { %v861_v32 = vmax.f32 %v651_v28, 0.0 }
 0x106   : > { %v859_v34 = vmax.f32 %v643_v30, 0.0 }
 0x107   : > { %v917_v35 = vpack.c.bf16 %v861_v32, %v860_v31 }
 0x108   : > { %v916_v36 = vpack.c.bf16 %v859_v34, %v858_v33  ;;  %v2398_v37 = vpop.f32.mrb[16].mxu0 }
 0x109   : > { %v664_v38 = vadd.f32 %v2398_v37, %v3156_v43  ;;  %v655_v39 = vpop.f32.mrb[17].mxu0 }
 0x10a   : > { %v656_v40 = vadd.f32 %v3156_v43, %v655_v39  ;;  %v2399_v41 = vpop.f32.mrb[18].mxu0  ;;  %2464 = vmatprep.mubr.msk.bf16.mxu1 %vm981_vm2, %v916_v36 }
 0x10b   : > { %v667_v42 = vadd.f32 %v2399_v41, %v3156_v43  ;;  %v658_v44 = vpop.f32.mrb[19].mxu0  ;;  %2465 = vmatmul.mubr.msk.bf16.gmra.mrb[12].mxu1 %vm981_vm2, %v917_v35  ;;  %v864_v46 = vmax.f32 %v664_v38, 0.0 }
 0x10c   : > { %v659_v45 = vadd.f32 %v3156_v43, %v658_v44  ;;  %v862_v48 = vmax.f32 %v656_v40, 0.0 }
 0x10d   : > { %v865_v47 = vmax.f32 %v667_v42, 0.0 }
 0x10e   : > { %v863_v49 = vmax.f32 %v659_v45, 0.0 }
 0x10f   : > { %v919_v50 = vpack.c.bf16 %v865_v47, %v864_v46 }
 0x110   : > { %v918_v51 = vpack.c.bf16 %v863_v49, %v862_v48  ;;  %v2402_v52 = vpop.f32.mrb[20].mxu0 }
 0x111   : > { %v680_v53 = vadd.f32 %v2402_v52, %v3156_v43  ;;  %v671_v54 = vpop.f32.mrb[21].mxu0 }
 0x112   : > { %v672_v55 = vadd.f32 %v3156_v43, %v671_v54  ;;  %v2403_v56 = vpop.f32.mrb[22].mxu0  ;;  %2468 = vmatprep.mubr.msk.bf16.mxu1 %vm981_vm2, %v918_v51 }
 0x113   : > { %v683_v57 = vadd.f32 %v2403_v56, %v3156_v43  ;;  %v674_v58 = vpop.f32.mrb[23].mxu0  ;;  %2469 = vmatmul.mubr.msk.bf16.gmra.mrb[16].mxu1 %vm981_vm2, %v919_v50  ;;  %v868_v60 = vmax.f32 %v680_v53, 0.0 }
 0x114   : > { %v675_v59 = vadd.f32 %v3156_v43, %v674_v58  ;;  %v866_v62 = vmax.f32 %v672_v55, 0.0 }
 0x115   : > { %v869_v61 = vmax.f32 %v683_v57, 0.0 }
 0x116   : > { %v867_v63 = vmax.f32 %v675_v59, 0.0 }
 0x117   : > { %v921_v0 = vpack.c.bf16 %v869_v61, %v868_v60 }
 0x118   : > { %v920_v1 = vpack.c.bf16 %v867_v63, %v866_v62  ;;  %v2406_v2 = vpop.f32.mrb[24].mxu0 }
 0x119   : > { %v696_v3 = vadd.f32 %v2406_v2, %v3156_v43  ;;  %v687_v4 = vpop.f32.mrb[25].mxu0 }
 0x11a   : > { %v688_v5 = vadd.f32 %v3156_v43, %v687_v4  ;;  %v2407_v7 = vpop.f32.mrb[26].mxu0  ;;  %2472 = vmatprep.mubr.msk.bf16.mxu1 %vm981_vm2, %v920_v1 }
 0x11b   : > { %v699_v8 = vadd.f32 %v2407_v7, %v3156_v43  ;;  %v690_v9 = vpop.f32.mrb[27].mxu0  ;;  %2473 = vmatmul.mubr.msk.bf16.gmra.mrb[20].mxu1 %vm981_vm2, %v921_v0  ;;  %v872_v11 = vmax.f32 %v696_v3, 0.0 }
 0x11c   : > { %v691_v10 = vadd.f32 %v3156_v43, %v690_v9  ;;  %v870_v13 = vmax.f32 %v688_v5, 0.0 }
 0x11d   : > { %v873_v12 = vmax.f32 %v699_v8, 0.0 }
 0x11e   : > { %v871_v14 = vmax.f32 %v691_v10, 0.0 }
 0x11f   : > { %v923_v15 = vpack.c.bf16 %v873_v12, %v872_v11 }
 0x120   : > { %v922_v16 = vpack.c.bf16 %v871_v14, %v870_v13  ;;  %v2410_v17 = vpop.f32.mrb[28].mxu0 }
 0x121   : > { %v712_v18 = vadd.f32 %v2410_v17, %v3156_v43  ;;  %v703_v19 = vpop.f32.mrb[29].mxu0 }
 0x122   : > { %v704_v20 = vadd.f32 %v3156_v43, %v703_v19  ;;  %v2411_v21 = vpop.f32.mrb[30].mxu0  ;;  %2476 = vmatprep.mubr.msk.bf16.mxu1 %vm981_vm2, %v922_v16 }
 0x123   : > { %v715_v22 = vadd.f32 %v2411_v21, %v3156_v43  ;;  %v706_v23 = vpop.f32.mrb[31].mxu0  ;;  %2477 = vmatmul.mubr.msk.bf16.gmra.mrb[24].mxu1 %vm981_vm2, %v923_v15  ;;  %v876_v25 = vmax.f32 %v712_v18, 0.0 }
 0x124   : > { %v707_v24 = vadd.f32 %v3156_v43, %v706_v23  ;;  %v874_v27 = vmax.f32 %v704_v20, 0.0 }
 0x125   : > { %v877_v26 = vmax.f32 %v715_v22, 0.0 }
 0x126   : > { %v875_v28 = vmax.f32 %v707_v24, 0.0 }
 0x127   : > { %v925_v29 = vpack.c.bf16 %v877_v26, %v876_v25 }
 0x128   : > { %v924_v30 = vpack.c.bf16 %v875_v28, %v874_v27  ;;  %v2414_v31 = vpop.f32.mrb[32].mxu0 }
 0x129   : > { %v728_v32 = vadd.f32 %v2414_v31, %v3156_v43  ;;  %v719_v33 = vpop.f32.mrb[33].mxu0 }
 0x12a   : > { %v720_v34 = vadd.f32 %v3156_v43, %v719_v33  ;;  %v2415_v35 = vpop.f32.mrb[34].mxu0  ;;  %2480 = vmatprep.mubr.msk.bf16.mxu1 %vm981_vm2, %v924_v30 }
 0x12b   : > { %v731_v36 = vadd.f32 %v2415_v35, %v3156_v43  ;;  %v722_v37 = vpop.f32.mrb[35].mxu0  ;;  %2481 = vmatmul.mubr.msk.bf16.gmra.mrb[28].mxu1 %vm981_vm2, %v925_v29  ;;  %v880_v39 = vmax.f32 %v728_v32, 0.0 }
 0x12c   : > { %v723_v38 = vadd.f32 %v3156_v43, %v722_v37  ;;  %v878_v41 = vmax.f32 %v720_v34, 0.0 }
 0x12d   : > { %v881_v40 = vmax.f32 %v731_v36, 0.0 }
 0x12e   : > { %v879_v42 = vmax.f32 %v723_v38, 0.0 }
 0x12f   : > { %v927_v44 = vpack.c.bf16 %v881_v40, %v880_v39 }
 0x130   : > { %v926_v45 = vpack.c.bf16 %v879_v42, %v878_v41  ;;  %v2418_v46 = vpop.f32.mrb[36].mxu0 }
 0x131   : > { %v744_v47 = vadd.f32 %v2418_v46, %v3156_v43  ;;  %v735_v48 = vpop.f32.mrb[37].mxu0 }
 0x132   : > { %v736_v49 = vadd.f32 %v3156_v43, %v735_v48  ;;  %v2419_v50 = vpop.f32.mrb[38].mxu0  ;;  %2484 = vmatprep.mubr.msk.bf16.mxu1 %vm981_vm2, %v926_v45 }
 0x133   : > { %v747_v51 = vadd.f32 %v2419_v50, %v3156_v43  ;;  %v738_v52 = vpop.f32.mrb[39].mxu0  ;;  %2485 = vmatmul.mubr.msk.bf16.gmra.mrb[32].mxu1 %vm981_vm2, %v927_v44  ;;  %v884_v54 = vmax.f32 %v744_v47, 0.0 }
 0x134   : > { %v739_v53 = vadd.f32 %v3156_v43, %v738_v52  ;;  %v882_v56 = vmax.f32 %v736_v49, 0.0 }
 0x135   : > { %v885_v55 = vmax.f32 %v747_v51, 0.0 }
 0x136   : > { %v883_v57 = vmax.f32 %v739_v53, 0.0 }
 0x137   : > { %v929_v58 = vpack.c.bf16 %v885_v55, %v884_v54 }
 0x138   : > { %v928_v59 = vpack.c.bf16 %v883_v57, %v882_v56  ;;  %v2422_v60 = vpop.f32.mrb[40].mxu0 }
 0x139   : > { %v760_v61 = vadd.f32 %v2422_v60, %v3156_v43  ;;  %v751_v62 = vpop.f32.mrb[41].mxu0 }
 0x13a   : > { %v752_v63 = vadd.f32 %v3156_v43, %v751_v62  ;;  %v2423_v0 = vpop.f32.mrb[42].mxu0  ;;  %2488 = vmatprep.mubr.msk.bf16.mxu1 %vm981_vm2, %v928_v59 }
 0x13b   : > { %v763_v1 = vadd.f32 %v2423_v0, %v3156_v43  ;;  %v754_v2 = vpop.f32.mrb[43].mxu0  ;;  %2489 = vmatmul.mubr.msk.bf16.gmra.mrb[36].mxu1 %vm981_vm2, %v929_v58  ;;  %v888_v4 = vmax.f32 %v760_v61, 0.0 }
 0x13c   : > { %v755_v3 = vadd.f32 %v3156_v43, %v754_v2  ;;  %v886_v7 = vmax.f32 %v752_v63, 0.0 }
 0x13d   : > { %v889_v5 = vmax.f32 %v763_v1, 0.0 }
 0x13e   : > { %v887_v8 = vmax.f32 %v755_v3, 0.0 }
 0x13f   : > { %v931_v9 = vpack.c.bf16 %v889_v5, %v888_v4 }
 0x140   : > { %v930_v10 = vpack.c.bf16 %v887_v8, %v886_v7  ;;  %v2426_v11 = vpop.f32.mrb[44].mxu0 }
 0x141   : > { %v776_v12 = vadd.f32 %v2426_v11, %v3156_v43  ;;  %v767_v13 = vpop.f32.mrb[45].mxu0 }
 0x142   : > { %v768_v14 = vadd.f32 %v3156_v43, %v767_v13  ;;  %v2427_v15 = vpop.f32.mrb[46].mxu0  ;;  %2492 = vmatprep.mubr.msk.bf16.mxu1 %vm981_vm2, %v930_v10 }
 0x143   : > { %v779_v16 = vadd.f32 %v2427_v15, %v3156_v43  ;;  %v770_v17 = vpop.f32.mrb[47].mxu0  ;;  %2493 = vmatmul.mubr.msk.bf16.gmra.mrb[40].mxu1 %vm981_vm2, %v931_v9  ;;  %v892_v19 = vmax.f32 %v776_v12, 0.0 }
 0x144   : > { %v771_v18 = vadd.f32 %v3156_v43, %v770_v17  ;;  %v890_v21 = vmax.f32 %v768_v14, 0.0 }
 0x145   : > { %v893_v20 = vmax.f32 %v779_v16, 0.0 }
 0x146   : > { %v891_v22 = vmax.f32 %v771_v18, 0.0 }
 0x147   : > { %v933_v23 = vpack.c.bf16 %v893_v20, %v892_v19  ;;  %v3257_v19 = vld [vmem:[%s4119_s4] ss:$0 sm:$0xff] }
 0x148   : > { %v932_v24 = vpack.c.bf16 %v891_v22, %v890_v21  ;;  %v2430_v25 = vpop.f32.mrb[48].mxu0 }
 0x149   : > { %v792_v26 = vadd.f32 %v2430_v25, %v3156_v43  ;;  %v783_v27 = vpop.f32.mrb[49].mxu0 }
 0x14a   : > { %v784_v28 = vadd.f32 %v3156_v43, %v783_v27  ;;  %v2431_v29 = vpop.f32.mrb[50].mxu0  ;;  %2496 = vmatprep.mubr.msk.bf16.mxu1 %vm981_vm2, %v932_v24 }
 0x14b   : > { %v795_v30 = vadd.f32 %v2431_v29, %v3156_v43  ;;  %v786_v31 = vpop.f32.mrb[51].mxu0  ;;  %2497 = vmatmul.mubr.msk.bf16.gmra.mrb[44].mxu1 %vm981_vm2, %v933_v23  ;;  %v896_v33 = vmax.f32 %v792_v26, 0.0 }
 0x14c   : > { %v787_v32 = vadd.f32 %v3156_v43, %v786_v31  ;;  %v894_v35 = vmax.f32 %v784_v28, 0.0 }
 0x14d   : > { %v897_v34 = vmax.f32 %v795_v30, 0.0 }
 0x14e   : > { %v895_v36 = vmax.f32 %v787_v32, 0.0 }
 0x14f   : > { %v935_v37 = vpack.c.bf16 %v897_v34, %v896_v33 }
 0x150   : > { %v934_v38 = vpack.c.bf16 %v895_v36, %v894_v35  ;;  %v2434_v39 = vpop.f32.mrb[52].mxu0 }
 0x151   : > { %v808_v40 = vadd.f32 %v2434_v39, %v3156_v43  ;;  %v799_v41 = vpop.f32.mrb[53].mxu0 }
 0x152   : > { %v800_v42 = vadd.f32 %v3156_v43, %v799_v41  ;;  %v2435_v44 = vpop.f32.mrb[54].mxu0  ;;  %2500 = vmatprep.mubr.msk.bf16.mxu1 %vm981_vm2, %v934_v38 }
 0x153   : > { %v811_v45 = vadd.f32 %v2435_v44, %v3156_v43  ;;  %v802_v46 = vpop.f32.mrb[55].mxu0  ;;  %2501 = vmatmul.mubr.msk.bf16.gmra.mrb[48].mxu1 %vm981_vm2, %v935_v37  ;;  %v900_v48 = vmax.f32 %v808_v40, 0.0 }
 0x154   : > { %v803_v47 = vadd.f32 %v3156_v43, %v802_v46  ;;  %v898_v50 = vmax.f32 %v800_v42, 0.0 }
 0x155   : > { %v901_v49 = vmax.f32 %v811_v45, 0.0 }
 0x156   : > { %v899_v51 = vmax.f32 %v803_v47, 0.0 }
 0x157   : > { %v937_v52 = vpack.c.bf16 %v901_v49, %v900_v48 }
 0x158   : > { %v936_v53 = vpack.c.bf16 %v899_v51, %v898_v50  ;;  %v2438_v54 = vpop.f32.mrb[56].mxu0 }
 0x159   : > { %v824_v55 = vadd.f32 %v2438_v54, %v3156_v43  ;;  %v815_v56 = vpop.f32.mrb[57].mxu0 }
 0x15a   : > { %v816_v57 = vadd.f32 %v3156_v43, %v815_v56  ;;  %v2439_v58 = vpop.f32.mrb[58].mxu0  ;;  %2504 = vmatprep.mubr.msk.bf16.mxu1 %vm981_vm2, %v936_v53 }
 0x15b   : > { %v827_v59 = vadd.f32 %v2439_v58, %v3156_v43  ;;  %v818_v60 = vpop.f32.mrb[59].mxu0  ;;  %2505 = vmatmul.mubr.msk.bf16.gmra.mrb[52].mxu1 %vm981_vm2, %v937_v52  ;;  %v904_v62 = vmax.f32 %v824_v55, 0.0 }
 0x15c   : > { %v819_v61 = vadd.f32 %v3156_v43, %v818_v60  ;;  %v902_v0 = vmax.f32 %v816_v57, 0.0 }
 0x15d   : > { %v905_v63 = vmax.f32 %v827_v59, 0.0 }
 0x15e   : > { %v903_v1 = vmax.f32 %v819_v61, 0.0 }
 0x15f   : > { %v939_v2 = vpack.c.bf16 %v905_v63, %v904_v62 }
 0x160   : > { %v938_v3 = vpack.c.bf16 %v903_v1, %v902_v0  ;;  %v2442_v4 = vpop.f32.mrb[60].mxu0 }
 0x161   : > { %v840_v5 = vadd.f32 %v2442_v4, %v3156_v43  ;;  %v831_v7 = vpop.f32.mrb[61].mxu0 }
 0x162   : > { %v832_v8 = vadd.f32 %v3156_v43, %v831_v7  ;;  %v2443_v9 = vpop.f32.mrb[62].mxu0  ;;  %2508 = vmatprep.mubr.msk.bf16.mxu1 %vm981_vm2, %v938_v3 }
 0x163   : > { %v843_v10 = vadd.f32 %v2443_v9, %v3156_v43  ;;  %v834_v11 = vpop.f32.mrb[63].mxu0  ;;  %2509 = vmatmul.mubr.msk.bf16.gmra.mrb[56].mxu1 %vm981_vm2, %v939_v2  ;;  %v908_v13 = vmax.f32 %v840_v5, 0.0 }
 0x164   : > { %v835_v12 = vadd.f32 %v3156_v43, %v834_v11  ;;  %v906_v15 = vmax.f32 %v832_v8, 0.0 }
 0x165   : > { %v909_v14 = vmax.f32 %v843_v10, 0.0 }
 0x166   : > { %v907_v16 = vmax.f32 %v835_v12, 0.0 }
 0x167   : > { %v941_v17 = vpack.c.bf16 %v909_v14, %v908_v13 }
 0x168   : > { %v940_v18 = vpack.c.bf16 %v907_v16, %v906_v15 }
 0x16a   : > { %2512 = vmatprep.mubr.msk.bf16.mxu1 %vm981_vm2, %v940_v18 }
 0x16b   : > { %2513 = vmatmul.mubr.msk.bf16.gmra.mrb[60].mxu1 %vm981_vm2, %v941_v17 }
 0x1c6   : > { %v2454_v20 = vpop.f32.mrb[0].mxu1 }
 0x1c7   : > { %v1121_v21 = vadd.f32 %v2454_v20, %v3257_v19  ;;  %v1112_v22 = vpop.f32.mrb[1].mxu1 }
 0x1c8   : > { %v1113_v43 = vadd.f32 %v3257_v19, %v1112_v22  ;;  %v2455_v23 = vpop.f32.mrb[2].mxu1 }
 0x1c9   : > { %2530 = vtanh.f32 %v1121_v21  ;;  %v1124_v24 = vadd.f32 %v2455_v23, %v3257_v19  ;;  %1755 = vrot.lane.b32.xlu1 %v1121_v21, %s2858_s18  ;;  %v1115_v25 = vpop.f32.mrb[3].mxu1 }
 0x1ca   : > { %2532 = vtanh.f32 %v1113_v43  ;;  %v1116_v26 = vadd.f32 %v3257_v19, %v1115_v25  ;;  %1751 = vrot.lane.b32.xlu0 %v1113_v43, %s2858_s18 }
 0x1cb   : > { %2534 = vtanh.f32 %v1124_v24 }
 0x1cc   : > { %2536 = vtanh.f32 %v1116_v26 }
 0x1cd   : > { %1757 = vrot.lane.b32.xlu1 %v1124_v24, %s2858_s18 }
 0x1ce   : > { %v2458_v27 = vpop.f32.mrb[4].mxu1  ;;  %1753 = vrot.lane.b32.xlu0 %v1116_v26, %s2858_s18 }
 0x1cf   : > { %v1137_v28 = vadd.f32 %v2458_v27, %v3257_v19  ;;  %v1128_v29 = vpop.f32.mrb[5].mxu1 }
 0x1d0   : > { %v1129_v30 = vadd.f32 %v3257_v19, %v1128_v29  ;;  %v2459_v31 = vpop.f32.mrb[6].mxu1 }
 0x1d1   : > { %2538 = vtanh.f32 %v1137_v28  ;;  %v1140_v32 = vadd.f32 %v2459_v31, %v3257_v19  ;;  %v1131_v33 = vpop.f32.mrb[7].mxu1 }
 0x1d2   : > { %2540 = vtanh.f32 %v1129_v30  ;;  %v1132_v34 = vadd.f32 %v3257_v19, %v1131_v33  ;;  %1763 = vrot.lane.b32.xlu0 %v1137_v28, %s2858_s18 }
 0x1d3   : > { %v3278_v35 = vpop.eup %2530  ;;  %2542 = vtanh.f32 %v1140_v32  ;;  %1765 = vrot.lane.b32.xlu1 %v1140_v32, %s2858_s18 }
 0x1d4   : > { %v3281_v36 = vpop.eup %2532  ;;  %2073 = vst.msk [vmem:[%s3273_s22 + $0x10] sm:$0xff] %vm460_vm1, %v3278_v35  ;;  %2544 = vtanh.f32 %v1132_v34 }
 0x1d5   : > { %v3286_v37 = vpop.eup %2534  ;;  %2071 = vst.msk [vmem:[%s3273_s22] sm:$0xff] %vm460_vm1, %v3281_v36 }
 0x1d6   : > { %v3291_v38 = vpop.eup %2536  ;;  %2074 = vst.msk [vmem:[%s3273_s22 + $0x18] sm:$0xff] %vm460_vm1, %v3286_v37  ;;  %v2462_v39 = vpop.f32.mrb[8].mxu1  ;;  %1759 = vrot.lane.b32.xlu0 %v1129_v30, %s2858_s18 }
 0x1d7   : > { %2072 = vst.msk [vmem:[%s3273_s22 + $0x8] sm:$0xff] %vm460_vm1, %v3291_v38  ;;  %v1153_v40 = vadd.f32 %v2462_v39, %v3257_v19  ;;  %v1144_v41 = vpop.f32.mrb[9].mxu1  ;;  %1761 = vrot.lane.b32.xlu1 %v1132_v34, %s2858_s18 }
 0x1d8   : > { %v1145_v42 = vadd.f32 %v3257_v19, %v1144_v41  ;;  %v2463_v44 = vpop.f32.mrb[10].mxu1 }
 0x1d9   : > { %v1156_v45 = vadd.f32 %v2463_v44, %v3257_v19  ;;  %v1147_v46 = vpop.f32.mrb[11].mxu1  ;;  %2546 = vtanh.f32 %v1153_v40 }
 0x1da   : > { %v1148_v47 = vadd.f32 %v3257_v19, %v1147_v46  ;;  %1771 = vrot.lane.b32.xlu0 %v1153_v40, %s2858_s18  ;;  %2548 = vtanh.f32 %v1145_v42 }
 0x1db   : > { %v3306_v48 = vpop.eup %2538  ;;  %1773 = vrot.lane.b32.xlu1 %v1156_v45, %s2858_s18  ;;  %2550 = vtanh.f32 %v1156_v45 }
 0x1dc   : > { %v3309_v49 = vpop.eup %2540  ;;  %2077 = vst.msk [vmem:[%s3273_s22 + $0x30] sm:$0xff] %vm460_vm1, %v3306_v48  ;;  %2552 = vtanh.f32 %v1148_v47 }
 0x1dd   : > { %v3314_v50 = vpop.eup %2542  ;;  %2075 = vst.msk [vmem:[%s3273_s22 + $0x20] sm:$0xff] %vm460_vm1, %v3309_v49 }
 0x1de   : > { %v3319_v51 = vpop.eup %2544  ;;  %2078 = vst.msk [vmem:[%s3273_s22 + $0x38] sm:$0xff] %vm460_vm1, %v3314_v50  ;;  %v2466_v52 = vpop.f32.mrb[12].mxu1  ;;  %1767 = vrot.lane.b32.xlu0 %v1145_v42, %s2858_s18 }
 0x1df   : > { %2076 = vst.msk [vmem:[%s3273_s22 + $0x28] sm:$0xff] %vm460_vm1, %v3319_v51  ;;  %v1169_v53 = vadd.f32 %v2466_v52, %v3257_v19  ;;  %v1160_v54 = vpop.f32.mrb[13].mxu1  ;;  %1769 = vrot.lane.b32.xlu1 %v1148_v47, %s2858_s18 }
 0x1e0   : > { %v1161_v55 = vadd.f32 %v3257_v19, %v1160_v54  ;;  %v2467_v56 = vpop.f32.mrb[14].mxu1 }
 0x1e1   : > { %v1172_v57 = vadd.f32 %v2467_v56, %v3257_v19  ;;  %v1163_v58 = vpop.f32.mrb[15].mxu1  ;;  %2554 = vtanh.f32 %v1169_v53 }
 0x1e2   : > { %v1164_v59 = vadd.f32 %v3257_v19, %v1163_v58  ;;  %1779 = vrot.lane.b32.xlu0 %v1169_v53, %s2858_s18  ;;  %2556 = vtanh.f32 %v1161_v55 }
 0x1e3   : > { %1781 = vrot.lane.b32.xlu1 %v1172_v57, %s2858_s18  ;;  %v3335_v60 = vpop.eup %2546  ;;  %2558 = vtanh.f32 %v1172_v57 }
 0x1e4   : > { %v3337_v61 = vpop.eup %2548  ;;  %2081 = vst.msk [vmem:[%s3273_s22 + $0x50] sm:$0xff] %vm460_vm1, %v3335_v60  ;;  %2560 = vtanh.f32 %v1164_v59 }
 0x1e5   : > { %v3342_v62 = vpop.eup %2550  ;;  %2079 = vst.msk [vmem:[%s3273_s22 + $0x40] sm:$0xff] %vm460_vm1, %v3337_v61 }
 0x1e6   : > { %v2470_v63 = vpop.f32.mrb[16].mxu1  ;;  %1775 = vrot.lane.b32.xlu0 %v1161_v55, %s2858_s18  ;;  %v3348_v0 = vpop.eup %2552  ;;  %2082 = vst.msk [vmem:[%s3273_s22 + $0x58] sm:$0xff] %vm460_vm1, %v3342_v62 }
 0x1e7   : > { %v1185_v1 = vadd.f32 %v2470_v63, %v3257_v19  ;;  %v1176_v2 = vpop.f32.mrb[17].mxu1  ;;  %1777 = vrot.lane.b32.xlu1 %v1164_v59, %s2858_s18  ;;  %2080 = vst.msk [vmem:[%s3273_s22 + $0x48] sm:$0xff] %vm460_vm1, %v3348_v0 }
 0x1e8   : > { %v1177_v3 = vadd.f32 %v3257_v19, %v1176_v2  ;;  %v2471_v4 = vpop.f32.mrb[18].mxu1 }
 0x1e9   : > { %v1188_v5 = vadd.f32 %v2471_v4, %v3257_v19  ;;  %v1179_v7 = vpop.f32.mrb[19].mxu1  ;;  %2562 = vtanh.f32 %v1185_v1 }
 0x1ea   : > { %v1180_v8 = vadd.f32 %v3257_v19, %v1179_v7  ;;  %1787 = vrot.lane.b32.xlu0 %v1185_v1, %s2858_s18  ;;  %2564 = vtanh.f32 %v1177_v3 }
 0x1eb   : > { %1789 = vrot.lane.b32.xlu1 %v1188_v5, %s2858_s18  ;;  %v3363_v9 = vpop.eup %2554  ;;  %2566 = vtanh.f32 %v1188_v5 }
 0x1ec   : > { %v3365_v10 = vpop.eup %2556  ;;  %2085 = vst.msk [vmem:[%s3273_s22 + $0x70] sm:$0xff] %vm460_vm1, %v3363_v9  ;;  %2568 = vtanh.f32 %v1180_v8 }
 0x1ed   : > { %v3370_v11 = vpop.eup %2558  ;;  %2083 = vst.msk [vmem:[%s3273_s22 + $0x60] sm:$0xff] %vm460_vm1, %v3365_v10 }
 0x1ee   : > { %v2474_v12 = vpop.f32.mrb[20].mxu1  ;;  %1783 = vrot.lane.b32.xlu0 %v1177_v3, %s2858_s18  ;;  %v3376_v13 = vpop.eup %2560  ;;  %2086 = vst.msk [vmem:[%s3273_s22 + $0x78] sm:$0xff] %vm460_vm1, %v3370_v11 }
 0x1ef   : > { %v1201_v14 = vadd.f32 %v2474_v12, %v3257_v19  ;;  %v1192_v15 = vpop.f32.mrb[21].mxu1  ;;  %1785 = vrot.lane.b32.xlu1 %v1180_v8, %s2858_s18  ;;  %2084 = vst.msk [vmem:[%s3273_s22 + $0x68] sm:$0xff] %vm460_vm1, %v3376_v13 }
 0x1f0   : > { %v1193_v16 = vadd.f32 %v3257_v19, %v1192_v15  ;;  %v2475_v17 = vpop.f32.mrb[22].mxu1 }
 0x1f1   : > { %v1204_v18 = vadd.f32 %v2475_v17, %v3257_v19  ;;  %v1195_v20 = vpop.f32.mrb[23].mxu1  ;;  %2570 = vtanh.f32 %v1201_v14 }
 0x1f2   : > { %v1196_v21 = vadd.f32 %v3257_v19, %v1195_v20  ;;  %1795 = vrot.lane.b32.xlu0 %v1201_v14, %s2858_s18  ;;  %2572 = vtanh.f32 %v1193_v16 }
 0x1f3   : > { %1797 = vrot.lane.b32.xlu1 %v1204_v18, %s2858_s18  ;;  %v3391_v22 = vpop.eup %2562  ;;  %2574 = vtanh.f32 %v1204_v18 }
 0x1f4   : > { %v3393_v43 = vpop.eup %2564  ;;  %2089 = vst.msk [vmem:[%s3273_s22 + $0x90] sm:$0xff] %vm460_vm1, %v3391_v22  ;;  %2576 = vtanh.f32 %v1196_v21 }
 0x1f5   : > { %v3399_v24 = vpop.eup %2566  ;;  %2087 = vst.msk [vmem:[%s3273_s22 + $0x80] sm:$0xff] %vm460_vm1, %v3393_v43 }
 0x1f6   : > { %v2478_v23 = vpop.f32.mrb[24].mxu1  ;;  %1791 = vrot.lane.b32.xlu0 %v1193_v16, %s2858_s18  ;;  %v3406_v27 = vpop.eup %2568  ;;  %2090 = vst.msk [vmem:[%s3273_s22 + $0x98] sm:$0xff] %vm460_vm1, %v3399_v24 }
 0x1f7   : > { %v1217_v25 = vadd.f32 %v2478_v23, %v3257_v19  ;;  %v1208_v26 = vpop.f32.mrb[25].mxu1  ;;  %1793 = vrot.lane.b32.xlu1 %v1196_v21, %s2858_s18  ;;  %2088 = vst.msk [vmem:[%s3273_s22 + $0x88] sm:$0xff] %vm460_vm1, %v3406_v27 }
 0x1f8   : > { %v2479_v28 = vpop.f32.mrb[26].mxu1  ;;  %v1209_v29 = vadd.f32 %v3257_v19, %v1208_v26 }
 0x1f9   : > { %v1220_v30 = vadd.f32 %v2479_v28, %v3257_v19  ;;  %v1211_v31 = vpop.f32.mrb[27].mxu1  ;;  %2578 = vtanh.f32 %v1217_v25 }
 0x1fa   : > { %1803 = vrot.lane.b32.xlu0 %v1217_v25, %s2858_s18  ;;  %v1212_v32 = vadd.f32 %v3257_v19, %v1211_v31  ;;  %2580 = vtanh.f32 %v1209_v29 }
 0x1fb   : > { %1805 = vrot.lane.b32.xlu1 %v1220_v30, %s2858_s18  ;;  %v3419_v33 = vpop.eup %2570  ;;  %2582 = vtanh.f32 %v1220_v30 }
 0x1fc   : > { %v3421_v34 = vpop.eup %2572  ;;  %2093 = vst.msk [vmem:[%s3273_s22 + $0xb0] sm:$0xff] %vm460_vm1, %v3419_v33  ;;  %2584 = vtanh.f32 %v1212_v32 }
 0x1fd   : > { %v3427_v40 = vpop.eup %2574  ;;  %2091 = vst.msk [vmem:[%s3273_s22 + $0xa0] sm:$0xff] %vm460_vm1, %v3421_v34 }
 0x1fe   : > { %v2482_v39 = vpop.f32.mrb[28].mxu1  ;;  %1799 = vrot.lane.b32.xlu0 %v1209_v29, %s2858_s18  ;;  %v3434_v44 = vpop.eup %2576  ;;  %2094 = vst.msk [vmem:[%s3273_s22 + $0xb8] sm:$0xff] %vm460_vm1, %v3427_v40 }
 0x1ff   : > { %v1233_v41 = vadd.f32 %v2482_v39, %v3257_v19  ;;  %v1224_v42 = vpop.f32.mrb[29].mxu1  ;;  %1801 = vrot.lane.b32.xlu1 %v1212_v32, %s2858_s18  ;;  %2092 = vst.msk [vmem:[%s3273_s22 + $0xa8] sm:$0xff] %vm460_vm1, %v3434_v44 }
 0x200   : > { %v2483_v45 = vpop.f32.mrb[30].mxu1  ;;  %v1225_v46 = vadd.f32 %v3257_v19, %v1224_v42 }
 0x201   : > { %v1236_v47 = vadd.f32 %v2483_v45, %v3257_v19  ;;  %v1227_v52 = vpop.f32.mrb[31].mxu1  ;;  %2586 = vtanh.f32 %v1233_v41 }
 0x202   : > { %1811 = vrot.lane.b32.xlu0 %v1233_v41, %s2858_s18  ;;  %v1228_v53 = vadd.f32 %v3257_v19, %v1227_v52  ;;  %2588 = vtanh.f32 %v1225_v46 }
 0x203   : > { %1813 = vrot.lane.b32.xlu1 %v1236_v47, %s2858_s18  ;;  %v3447_v54 = vpop.eup %2578  ;;  %2590 = vtanh.f32 %v1236_v47 }
 0x204   : > { %v3450_v56 = vpop.eup %2580  ;;  %2097 = vst.msk [vmem:[%s3273_s22 + $0xd0] sm:$0xff] %vm460_vm1, %v3447_v54  ;;  %2592 = vtanh.f32 %v1228_v53 }
 0x205   : > { %v3457_v59 = vpop.eup %2582  ;;  %2095 = vst.msk [vmem:[%s3273_s22 + $0xc0] sm:$0xff] %vm460_vm1, %v3450_v56 }
 0x206   : > { %v2486_v55 = vpop.f32.mrb[32].mxu1  ;;  %1807 = vrot.lane.b32.xlu0 %v1225_v46, %s2858_s18  ;;  %v3462_v1 = vpop.eup %2584  ;;  %2098 = vst.msk [vmem:[%s3273_s22 + $0xd8] sm:$0xff] %vm460_vm1, %v3457_v59 }
 0x207   : > { %v1249_v57 = vadd.f32 %v2486_v55, %v3257_v19  ;;  %v1240_v58 = vpop.f32.mrb[33].mxu1  ;;  %1809 = vrot.lane.b32.xlu1 %v1228_v53, %s2858_s18  ;;  %2096 = vst.msk [vmem:[%s3273_s22 + $0xc8] sm:$0xff] %vm460_vm1, %v3462_v1 }
 0x208   : > { %v2487_v63 = vpop.f32.mrb[34].mxu1  ;;  %v1241_v4 = vadd.f32 %v3257_v19, %v1240_v58 }
 0x209   : > { %v1252_v2 = vadd.f32 %v2487_v63, %v3257_v19  ;;  %v1243_v3 = vpop.f32.mrb[35].mxu1  ;;  %2594 = vtanh.f32 %v1249_v57 }
 0x20a   : > { %1819 = vrot.lane.b32.xlu0 %v1249_v57, %s2858_s18  ;;  %v1244_v5 = vadd.f32 %v3257_v19, %v1243_v3  ;;  %2596 = vtanh.f32 %v1241_v4 }
 0x20b   : > { %1821 = vrot.lane.b32.xlu1 %v1252_v2, %s2858_s18  ;;  %v3475_v7 = vpop.eup %2586  ;;  %2598 = vtanh.f32 %v1252_v2 }
 0x20c   : > { %v3478_v12 = vpop.eup %2588  ;;  %2101 = vst.msk [vmem:[%s3273_s22 + $0xf0] sm:$0xff] %vm460_vm1, %v3475_v7  ;;  %2600 = vtanh.f32 %v1244_v5 }
 0x20d   : > { %v3485_v16 = vpop.eup %2590  ;;  %2099 = vst.msk [vmem:[%s3273_s22 + $0xe0] sm:$0xff] %vm460_vm1, %v3478_v12 }
 0x20e   : > { %v2490_v8 = vpop.f32.mrb[36].mxu1  ;;  %1815 = vrot.lane.b32.xlu0 %v1241_v4, %s2858_s18  ;;  %v3490_v18 = vpop.eup %2592  ;;  %2102 = vst.msk [vmem:[%s3273_s22 + $0xf8] sm:$0xff] %vm460_vm1, %v3485_v16 }
 0x20f   : > { %v1265_v14 = vadd.f32 %v2490_v8, %v3257_v19  ;;  %v1256_v15 = vpop.f32.mrb[37].mxu1  ;;  %1817 = vrot.lane.b32.xlu1 %v1244_v5, %s2858_s18  ;;  %2100 = vst.msk [vmem:[%s3273_s22 + $0xe8] sm:$0xff] %vm460_vm1, %v3490_v18  ;;  %v1435_v8 = vmul.f32 1.442695, %v3278_v35 }
 0x210   : > { %v2491_v17 = vpop.f32.mrb[38].mxu1  ;;  %v1257_v23 = vadd.f32 %v3257_v19, %v1256_v15 }
 0x211   : > { %v1268_v20 = vadd.f32 %v2491_v17, %v3257_v19  ;;  %v1259_v21 = vpop.f32.mrb[39].mxu1  ;;  %2602 = vtanh.f32 %v1265_v14 }
 0x212   : > { %1827 = vrot.lane.b32.xlu0 %v1265_v14, %s2858_s18  ;;  %v1260_v25 = vadd.f32 %v3257_v19, %v1259_v21  ;;  %2604 = vtanh.f32 %v1257_v23 }
 0x213   : > { %1829 = vrot.lane.b32.xlu1 %v1268_v20, %s2858_s18  ;;  %v3504_v28 = vpop.eup %2594  ;;  %2606 = vtanh.f32 %v1268_v20  ;;  %v1431_v20 = vmul.f32 1.442695, %v3281_v36 }
 0x214   : > { %v3508_v31 = vpop.eup %2596  ;;  %2105 = vst.msk [vmem:[%s3273_s22 + $0x110] sm:$0xff] %vm460_vm1, %v3504_v28  ;;  %2608 = vtanh.f32 %v1260_v25 }
 0x215   : > { %v3513_v39 = vpop.eup %2598  ;;  %2103 = vst.msk [vmem:[%s3273_s22 + $0x100] sm:$0xff] %vm460_vm1, %v3508_v31 }
 0x216   : > { %v2494_v26 = vpop.f32.mrb[40].mxu1  ;;  %1823 = vrot.lane.b32.xlu0 %v1257_v23, %s2858_s18  ;;  %v3519_v45 = vpop.eup %2600  ;;  %2106 = vst.msk [vmem:[%s3273_s22 + $0x118] sm:$0xff] %vm460_vm1, %v3513_v39 }
 0x217   : > { %v1281_v29 = vadd.f32 %v2494_v26, %v3257_v19  ;;  %v1272_v30 = vpop.f32.mrb[41].mxu1  ;;  %1825 = vrot.lane.b32.xlu1 %v1260_v25, %s2858_s18  ;;  %2104 = vst.msk [vmem:[%s3273_s22 + $0x108] sm:$0xff] %vm460_vm1, %v3519_v45  ;;  %v1437_v26 = vmul.f32 1.442695, %v3286_v37 }
 0x218   : > { %v2495_v32 = vpop.f32.mrb[42].mxu1  ;;  %v1273_v46 = vadd.f32 %v3257_v19, %v1272_v30 }
 0x219   : > { %2610 = vtanh.f32 %v1281_v29  ;;  %v1284_v41 = vadd.f32 %v2495_v32, %v3257_v19  ;;  %v1275_v42 = vpop.f32.mrb[43].mxu1  ;;  %v1433_v32 = vmul.f32 1.442695, %v3291_v38 }
 0x21a   : > { %1835 = vrot.lane.b32.xlu0 %v1281_v29, %s2858_s18  ;;  %v1276_v47 = vadd.f32 %v3257_v19, %v1275_v42  ;;  %2612 = vtanh.f32 %v1273_v46 }
 0x21b   : > { %1837 = vrot.lane.b32.xlu1 %v1284_v41, %s2858_s18  ;;  %v3532_v53 = vpop.eup %2602  ;;  %2614 = vtanh.f32 %v1284_v41 }
 0x21c   : > { %v3536_v58 = vpop.eup %2604  ;;  %2109 = vst.msk [vmem:[%s3273_s22 + $0x130] sm:$0xff] %vm460_vm1, %v3532_v53  ;;  %2616 = vtanh.f32 %v1276_v47 }
 0x21d   : > { %v3541_v2 = vpop.eup %2606  ;;  %2107 = vst.msk [vmem:[%s3273_s22 + $0x120] sm:$0xff] %vm460_vm1, %v3536_v58 }
 0x21e   : > { %v2498_v52 = vpop.f32.mrb[44].mxu1  ;;  %1831 = vrot.lane.b32.xlu0 %v1273_v46, %s2858_s18  ;;  %v3547_v5 = vpop.eup %2608  ;;  %2110 = vst.msk [vmem:[%s3273_s22 + $0x138] sm:$0xff] %vm460_vm1, %v3541_v2  ;;  %v1443_v46 = vmul.f32 1.442695, %v3306_v48 }
 0x21f   : > { %v1297_v55 = vadd.f32 %v2498_v52, %v3257_v19  ;;  %v1288_v57 = vpop.f32.mrb[45].mxu1  ;;  %1833 = vrot.lane.b32.xlu1 %v1276_v47, %s2858_s18  ;;  %2108 = vst.msk [vmem:[%s3273_s22 + $0x128] sm:$0xff] %vm460_vm1, %v3547_v5 }
 0x220   : > { %v2499_v63 = vpop.f32.mrb[46].mxu1  ;;  %v1289_v15 = vadd.f32 %v3257_v19, %v1288_v57 }
 0x221   : > { %2618 = vtanh.f32 %v1297_v55  ;;  %v1300_v3 = vadd.f32 %v2499_v63, %v3257_v19  ;;  %v1291_v4 = vpop.f32.mrb[47].mxu1  ;;  %v1445_v63 = vmul.f32 1.442695, %v3314_v50 }
 0x222   : > { %1843 = vrot.lane.b32.xlu0 %v1297_v55, %s2858_s18  ;;  %v1292_v35 = vadd.f32 %v3257_v19, %v1291_v4  ;;  %2620 = vpow2.f32 %v1435_v8 }
 0x223   : > { %v3554_v14 = vpop.eup %2610  ;;  %1845 = vrot.lane.b32.xlu1 %v1300_v3, %s2858_s18  ;;  %2622 = vtanh.f32 %v1289_v15 }
 0x224   : > { %2113 = vst.msk [vmem:[%s3273_s22 + $0x150] sm:$0xff] %vm460_vm1, %v3554_v14  ;;  %v3569_v25 = vpop.eup %2612  ;;  %2624 = vtanh.f32 %v1300_v3 }
 0x225   : > { %v3572_v30 = vpop.eup %2614  ;;  %2111 = vst.msk [vmem:[%s3273_s22 + $0x140] sm:$0xff] %vm460_vm1, %v3569_v25  ;;  %2626 = vtanh.f32 %v1292_v35 }
 0x226   : > { %v2502_v17 = vpop.f32.mrb[48].mxu1  ;;  %1839 = vrot.lane.b32.xlu0 %v1289_v15, %s2858_s18  ;;  %v3579_v42 = vpop.eup %2616  ;;  %2114 = vst.msk [vmem:[%s3273_s22 + $0x158] sm:$0xff] %vm460_vm1, %v3572_v30  ;;  %v1439_v15 = vmul.f32 1.442695, %v3309_v49  ;;  %v1451_v49 = vmul.f32 1.442695, %v3335_v60 }
 0x227   : > { %v1313_v21 = vadd.f32 %v2502_v17, %v3257_v19  ;;  %v1304_v23 = vpop.f32.mrb[49].mxu1  ;;  %1841 = vrot.lane.b32.xlu1 %v1292_v35, %s2858_s18  ;;  %2112 = vst.msk [vmem:[%s3273_s22 + $0x148] sm:$0xff] %vm460_vm1, %v3579_v42 }
 0x228   : > { %v2503_v29 = vpop.f32.mrb[50].mxu1  ;;  %v1305_v38 = vadd.f32 %v3257_v19, %v1304_v23 }
 0x229   : > { %v1316_v36 = vadd.f32 %v2503_v29, %v3257_v19  ;;  %v1307_v41 = vpop.f32.mrb[51].mxu1  ;;  %2628 = vtanh.f32 %v1313_v21 }
 0x22a   : > { %1851 = vrot.lane.b32.xlu0 %v1313_v21, %s2858_s18  ;;  %2630 = vpow2.f32 %v1431_v20  ;;  %v1308_v48 = vadd.f32 %v3257_v19, %v1307_v41  ;;  %v1441_v21 = vmul.f32 1.442695, %v3319_v51 }
 0x22b   : > { %v3586_v37 = vpop.eup %2618  ;;  %1853 = vrot.lane.b32.xlu1 %v1316_v36, %s2858_s18  ;;  %2632 = vpow2.f32 %v1437_v26 }
 0x22c   : > { %2117 = vst.msk [vmem:[%s3273_s22 + $0x170] sm:$0xff] %vm460_vm1, %v3586_v37  ;;  %2634 = vpow2.f32 %v1433_v32  ;;  %v2621_v57 = vpop.eup %2620 }
 0x22d   : > { %2636 = vpow2.f32 %v1443_v46  ;;  %v3602_v8 = vpop.eup %2622  ;;  %v1561_v46 = vsel %vm2919_vm0, 1.0, %v2621_v57 }
 0x22e   : > { %v2506_v47 = vpop.f32.mrb[52].mxu1  ;;  %1847 = vrot.lane.b32.xlu0 %v1305_v38, %s2858_s18  ;;  %2638 = vtanh.f32 %v1305_v38  ;;  %v3606_v20 = vpop.eup %2624  ;;  %2115 = vst.msk [vmem:[%s3273_s22 + $0x160] sm:$0xff] %vm460_vm1, %v3602_v8 }
 0x22f   : > { %v1329_v52 = vadd.f32 %v2506_v47, %v3257_v19  ;;  %v1320_v55 = vpop.f32.mrb[53].mxu1  ;;  %1849 = vrot.lane.b32.xlu1 %v1308_v48, %s2858_s18  ;;  %2640 = vtanh.f32 %v1316_v36  ;;  %v3613_v50 = vpop.eup %2626  ;;  %2118 = vst.msk [vmem:[%s3273_s22 + $0x178] sm:$0xff] %vm460_vm1, %v3606_v20 }
 0x230   : > { %v1321_v3 = vadd.f32 %v3257_v19, %v1320_v55  ;;  %v2507_v4 = vpop.f32.mrb[54].mxu1  ;;  %2642 = vtanh.f32 %v1308_v48  ;;  %2116 = vst.msk [vmem:[%s3273_s22 + $0x168] sm:$0xff] %vm460_vm1, %v3613_v50  ;;  %v1453_v48 = vmul.f32 1.442695, %v3342_v62  ;;  %v1449_v62 = vmul.f32 1.442695, %v3348_v0 }
 0x231   : > { %v1332_v35 = vadd.f32 %v2507_v4, %v3257_v19  ;;  %v1323_v17 = vpop.f32.mrb[55].mxu1  ;;  %2644 = vtanh.f32 %v1329_v52 }
 0x232   : > { %1859 = vrot.lane.b32.xlu0 %v1329_v52, %s2858_s18  ;;  %2646 = vtanh.f32 %v1321_v3  ;;  %v1324_v26 = vadd.f32 %v3257_v19, %v1323_v17 }
 0x233   : > { %1861 = vrot.lane.b32.xlu1 %v1332_v35, %s2858_s18  ;;  %v3620_v23 = vpop.eup %2628  ;;  %2648 = vpow2.f32 %v1445_v63 }
 0x234   : > { %v2631_v51 = vpop.eup %2630  ;;  %2650 = vpow2.f32 %v1439_v15  ;;  %2121 = vst.msk [vmem:[%s3273_s22 + $0x190] sm:$0xff] %vm460_vm1, %v3620_v23 }
 0x235   : > { %v2633_v60 = vpop.eup %2632  ;;  %2652 = vpow2.f32 %v1441_v21  ;;  %v1559_v55 = vsel %vm2919_vm0, 1.0, %v2631_v51 }
 0x236   : > { %v2510_v29 = vpop.f32.mrb[56].mxu1  ;;  %1855 = vrot.lane.b32.xlu0 %v1321_v3, %s2858_s18  ;;  %v3630_v32 = vpop.eup %2634  ;;  %2654 = vpow2.f32 %v1451_v49  ;;  %v1447_v3 = vmul.f32 1.442695, %v3337_v61  ;;  %v1459_v61 = vmul.f32 1.442695, %v3363_v9  ;;  %v2787_v49 = vld [vmem:[%s2917_s9] sm:$0xff] }
 0x237   : > { %v1345_v36 = vadd.f32 %v2510_v29, %v3257_v19  ;;  %v1336_v41 = vpop.f32.mrb[57].mxu1  ;;  %1857 = vrot.lane.b32.xlu1 %v1324_v26, %s2858_s18  ;;  %v3636_v38 = vpop.eup %2636  ;;  %2656 = vtanh.f32 %v1332_v35  ;;  %v2786_v35 = vld [vmem:[%s2917_s9 + $0x10] sm:$0xff]  ;;  %v1623_v51 = vmul.f32 %v2787_v49, %v1559_v55  ;;  %v1461_v29 = vmul.f32 1.442695, %v3370_v11 }
 0x238   : > { %v1337_v47 = vadd.f32 %v3257_v19, %v1336_v41  ;;  %v2511_v52 = vpop.f32.mrb[58].mxu1  ;;  %v3642_v63 = vpop.eup %2638  ;;  %2658 = vtanh.f32 %v1324_v26  ;;  %v1625_v17 = vmul.f32 %v2786_v35, %v1561_v46  ;;  %v1562_v26 = vsel %vm2919_vm0, 1.0, %v2633_v60 }
 0x239   : > { %v1348_v57 = vadd.f32 %v2511_v52, %v3257_v19  ;;  %v1339_v4 = vpop.f32.mrb[59].mxu1  ;;  %v3646_v15 = vpop.eup %2640  ;;  %2119 = vst.msk [vmem:[%s3273_s22 + $0x180] sm:$0xff] %vm460_vm1, %v3642_v63  ;;  %2660 = vtanh.f32 %v1345_v36  ;;  %v1560_v46 = vsel %vm2919_vm0, 1.0, %v3630_v32  ;;  %v2788_v32 = vld [vmem:[%s2917_s9 + $0x18] sm:$0xff] }
 0x23a   : > { %1867 = vrot.lane.b32.xlu0 %v1345_v36, %s2858_s18  ;;  %v3654_v21 = vpop.eup %2642  ;;  %2122 = vst.msk [vmem:[%s3273_s22 + $0x198] sm:$0xff] %vm460_vm1, %v3646_v15  ;;  %2662 = vtanh.f32 %v1337_v47  ;;  %v1340_v60 = vadd.f32 %v3257_v19, %v1339_v4  ;;  %v1626_v35 = vmul.f32 %v2788_v32, %v1562_v26 }
 0x23b   : > { %v1756_v0 = vpop.permute.xlu1 %1755  ;;  %1869 = vrot.lane.b32.xlu1 %v1348_v57, %s2858_s18  ;;  %v3670_v9 = vpop.eup %2644  ;;  %2664 = vpow2.f32 %v1453_v48  ;;  %2120 = vst.msk [vmem:[%s3273_s22 + $0x188] sm:$0xff] %vm460_vm1, %v3654_v21 }
 0x23c   : > { %v1945_v36 = vadd.f32 %v1756_v0, %v1625_v17  ;;  %v1752_v41 = vpop.permute.xlu0 %1751  ;;  %v3679_v52 = vpop.eup %2646  ;;  %2666 = vpow2.f32 %v1447_v3  ;;  %2125 = vst.msk [vmem:[%s3273_s22 + $0x1b0] sm:$0xff] %vm460_vm1, %v3670_v9 }
 0x23d   : > { %v1943_v11 = vadd.f32 %v1752_v41, %v1623_v51  ;;  %v2649_v48 = vpop.eup %2648  ;;  %2668 = vpow2.f32 %v1449_v62  ;;  %2123 = vst.msk [vmem:[%s3273_s22 + $0x1a0] sm:$0xff] %vm460_vm1, %v3679_v52  ;;  %v2789_v62 = vld [vmem:[%s2917_s9 + $0x8] sm:$0xff] }
 0x23e   : > { %2009 = vst.msk [vmem:[%s3664_s25 + $0x10] sm:$0xff] %vm460_vm1, %v1945_v36  ;;  %v2514_v55 = vpop.f32.mrb[60].mxu1  ;;  %1863 = vrot.lane.b32.xlu0 %v1337_v47, %s2858_s18  ;;  %v2651_v3 = vpop.eup %2650  ;;  %2670 = vpow2.f32 %v1459_v61  ;;  %v1624_v49 = vmul.f32 %v2789_v62, %v1560_v46  ;;  %v1565_v61 = vsel %vm2919_vm0, 1.0, %v3636_v38  ;;  %v2791_v62 = vld [vmem:[%s2917_s9 + $0x38] sm:$0xff] }
 0x23f   : > { %2007 = vst.msk [vmem:[%s3664_s25] sm:$0xff] %vm460_vm1, %v1943_v11  ;;  %v1361_v4 = vadd.f32 %v2514_v55, %v3257_v19  ;;  %v1758_v17 = vpop.permute.xlu1 %1757  ;;  %v1352_v0 = vpop.f32.mrb[61].mxu1  ;;  %1865 = vrot.lane.b32.xlu1 %v1340_v60, %s2858_s18  ;;  %2672 = vpow2.f32 %v1461_v29  ;;  %v1566_v29 = vsel %vm2919_vm0, 1.0, %v2649_v48  ;;  %v2790_v48 = vld [vmem:[%s2917_s9 + $0x30] sm:$0xff] }
 0x240   : > { %v2653_v51 = vpop.eup %2652  ;;  %v1946_v36 = vadd.f32 %v1758_v17, %v1626_v35  ;;  %v1353_v47 = vadd.f32 %v3257_v19, %v1352_v0  ;;  %v2515_v26 = vpop.f32.mrb[62].mxu1  ;;  %2674 = vtanh.f32 %v1348_v57  ;;  %v1455_v57 = vmul.f32 1.442695, %v3365_v10 }
 0x241   : > { %v1754_v41 = vpop.permute.xlu0 %1753  ;;  %v3701_v11 = vpop.eup %2654  ;;  %2676 = vtanh.f32 %v1340_v60  ;;  %v1629_v60 = vmul.f32 %v2790_v48, %v1565_v61  ;;  %v1457_v0 = vmul.f32 1.442695, %v3376_v13  ;;  %v1364_v13 = vadd.f32 %v2515_v26, %v3257_v19 }
 0x242   : > { %v1944_v55 = vadd.f32 %v1754_v41, %v1624_v49  ;;  %v1355_v32 = vpop.f32.mrb[63].mxu1  ;;  %v3705_v46 = vpop.eup %2656  ;;  %2010 = vst.msk [vmem:[%s3664_s25 + $0x18] sm:$0xff] %vm460_vm1, %v1946_v36  ;;  %1871 = vrot.lane.b32.xlu0 %v1353_v47, %s2858_s18  ;;  %2678 = vtanh.f32 %v1361_v4  ;;  %v1630_v49 = vmul.f32 %v2791_v62, %v1566_v29  ;;  %v1563_v36 = vsel %vm2919_vm0, 1.0, %v2651_v3 }
 0x243   : > { %v1356_v35 = vadd.f32 %v3257_v19, %v1355_v32  ;;  %v3711_v38 = vpop.eup %2658  ;;  %2126 = vst.msk [vmem:[%s3273_s22 + $0x1b8] sm:$0xff] %vm460_vm1, %v3705_v46  ;;  %2680 = vtanh.f32 %v1353_v47  ;;  %v1467_v48 = vmul.f32 1.442695, %v3391_v22  ;;  %v2792_v19 = vld [vmem:[%s2917_s9 + $0x20] sm:$0xff]  ;;  %v1569_v22 = vsel %vm2919_vm0, 1.0, %v3701_v11  ;;  %v2794_v11 = vld [vmem:[%s2917_s9 + $0x50] sm:$0xff] }
 0x244   : > { %2008 = vst.msk [vmem:[%s3664_s25 + $0x8] sm:$0xff] %vm460_vm1, %v1944_v55  ;;  %v3720_v17 = vpop.eup %2660  ;;  %2124 = vst.msk [vmem:[%s3273_s22 + $0x1a8] sm:$0xff] %vm460_vm1, %v3711_v38  ;;  %v1564_v55 = vsel %vm2919_vm0, 1.0, %v2653_v51  ;;  %2682 = vpow2.f32 %v1455_v57  ;;  %v1627_v26 = vmul.f32 %v2792_v19, %v1563_v36  ;;  %v1469_v51 = vmul.f32 1.442695, %v3399_v24 }
 0x245   : > { %1873 = vrot.lane.b32.xlu1 %v1356_v35, %s2858_s18  ;;  %v1764_v10 = vpop.permute.xlu0 %1763  ;;  %v3730_v41 = vpop.eup %2662  ;;  %2129 = vst.msk [vmem:[%s3273_s22 + $0x1d0] sm:$0xff] %vm460_vm1, %v3720_v17  ;;  %2684 = vpow2.f32 %v1457_v0 }
 0x246   : > { %v1949_v61 = vadd.f32 %v1764_v10, %v1629_v60  ;;  %v1766_v47 = vpop.permute.xlu1 %1765  ;;  %v2665_v32 = vpop.eup %2664  ;;  %2127 = vst.msk [vmem:[%s3273_s22 + $0x1c0] sm:$0xff] %vm460_vm1, %v3730_v41  ;;  %1875 = vrot.lane.b32.xlu0 %v1361_v4, %s2858_s18  ;;  %v2793_v4 = vld [vmem:[%s2917_s9 + $0x28] sm:$0xff]  ;;  %2686 = vtanh.f32 %v1364_v13 }
 0x247   : > { %v1950_v29 = vadd.f32 %v1766_v47, %v1630_v49  ;;  %v2667_v3 = vpop.eup %2666  ;;  %v1628_v62 = vmul.f32 %v2793_v4, %v1564_v55  ;;  %v1570_v24 = vsel %vm2919_vm0, 1.0, %v2665_v32  ;;  %2688 = vtanh.f32 %v1356_v35 }
 0x248   : > { %2013 = vst.msk [vmem:[%s3664_s25 + $0x30] sm:$0xff] %vm460_vm1, %v1949_v61  ;;  %v2669_v60 = vpop.eup %2668  ;;  %2690 = vpow2.f32 %v1467_v48  ;;  %v1463_v55 = vmul.f32 1.442695, %v3393_v43  ;;  %v1465_v32 = vmul.f32 1.442695, %v3406_v27  ;;  %v2795_v43 = vld [vmem:[%s2917_s9 + $0x58] sm:$0xff] }
 0x249   : > { %2014 = vst.msk [vmem:[%s3664_s25 + $0x38] sm:$0xff] %vm460_vm1, %v1950_v29  ;;  %1877 = vrot.lane.b32.xlu1 %v1364_v13, %s2858_s18  ;;  %v1760_v10 = vpop.permute.xlu0 %1759  ;;  %v2671_v57 = vpop.eup %2670  ;;  %v1633_v13 = vmul.f32 %v2794_v11, %v1569_v22  ;;  %2692 = vpow2.f32 %v1469_v51  ;;  %v1634_v48 = vmul.f32 %v2795_v43, %v1570_v24  ;;  %v1567_v19 = vsel %vm2919_vm0, 1.0, %v2667_v3  ;;  %v2796_v22 = vld [vmem:[%s2917_s9 + $0x40] sm:$0xff]  ;;  %v2797_v24 = vld [vmem:[%s2917_s9 + $0x48] sm:$0xff] }
 0x24a   : > { %v1947_v49 = vadd.f32 %v1760_v10, %v1627_v26  ;;  %v1762_v0 = vpop.permute.xlu1 %1761  ;;  %v2673_v36 = vpop.eup %2672  ;;  %v1568_v10 = vsel %vm2919_vm0, 1.0, %v2669_v60  ;;  %2694 = vpow2.f32 %v1463_v55  ;;  %v1475_v3 = vmul.f32 1.442695, %v3419_v33 }
 0x24b   : > { %v1948_v61 = vadd.f32 %v1762_v0, %v1628_v62  ;;  %v3756_v47 = vpop.eup %2674  ;;  %2696 = vpow2.f32 %v1465_v32  ;;  %v1477_v60 = vmul.f32 1.442695, %v3427_v40  ;;  %v1573_v33 = vsel %vm2919_vm0, 1.0, %v2671_v57  ;;  %v2798_v57 = vld [vmem:[%s2917_s9 + $0x70] sm:$0xff] }
 0x24c   : > { %2011 = vst.msk [vmem:[%s3664_s25 + $0x20] sm:$0xff] %vm460_vm1, %v1947_v49  ;;  %v3762_v29 = vpop.eup %2676  ;;  %2130 = vst.msk [vmem:[%s3273_s22 + $0x1d8] sm:$0xff] %vm460_vm1, %v3756_v47  ;;  %v1631_v49 = vmul.f32 %v2796_v22, %v1567_v19  ;;  %v1574_v32 = vsel %vm2919_vm0, 1.0, %v2673_v36  ;;  %2698 = vpow2.f32 %v1475_v3  ;;  %v1637_v19 = vmul.f32 %v2798_v57, %v1573_v33 }
 0x24d   : > { %2012 = vst.msk [vmem:[%s3664_s25 + $0x28] sm:$0xff] %vm460_vm1, %v1948_v61  ;;  %v1772_v35 = vpop.permute.xlu0 %1771  ;;  %v3773_v26 = vpop.eup %2678  ;;  %2128 = vst.msk [vmem:[%s3273_s22 + $0x1c8] sm:$0xff] %vm460_vm1, %v3762_v29  ;;  %v1632_v61 = vmul.f32 %v2797_v24, %v1568_v10  ;;  %2700 = vpow2.f32 %v1477_v60  ;;  %v2799_v10 = vld [vmem:[%s2917_s9 + $0x78] sm:$0xff]  ;;  %v1483_v24 = vmul.f32 1.442695, %v3447_v54 }
 0x24e   : > { %v1953_v27 = vadd.f32 %v1772_v35, %v1633_v13  ;;  %v1774_v51 = vpop.permute.xlu1 %1773  ;;  %v3780_v4 = vpop.eup %2680  ;;  %2133 = vst.msk [vmem:[%s3273_s22 + $0x1f0] sm:$0xff] %vm460_vm1, %v3773_v26 }
 0x24f   : > { %v1954_v62 = vadd.f32 %v1774_v51, %v1634_v48  ;;  %2131 = vst.msk [vmem:[%s3273_s22 + $0x1e0] sm:$0xff] %vm460_vm1, %v3780_v4  ;;  %v2683_v55 = vpop.eup %2682  ;;  %v1471_v48 = vmul.f32 1.442695, %v3421_v34  ;;  %v1473_v51 = vmul.f32 1.442695, %v3434_v44 }
 0x250   : > { %2017 = vst.msk [vmem:[%s3664_s25 + $0x50] sm:$0xff] %vm460_vm1, %v1953_v27  ;;  %v2685_v35 = vpop.eup %2684  ;;  %v1571_v34 = vsel %vm2919_vm0, 1.0, %v2683_v55  ;;  %v1485_v55 = vmul.f32 1.442695, %v3457_v59  ;;  %v1479_v59 = vmul.f32 1.442695, %v3450_v56 }
 0x251   : > { %2018 = vst.msk [vmem:[%s3664_s25 + $0x58] sm:$0xff] %vm460_vm1, %v1954_v62  ;;  %v1768_v0 = vpop.permute.xlu0 %1767  ;;  %v3800_v43 = vpop.eup %2686  ;;  %v1638_v62 = vmul.f32 %v2799_v10, %v1574_v32  ;;  %2702 = vpow2.f32 %v1471_v48 }
 0x252   : > { %v1951_v11 = vadd.f32 %v1768_v0, %v1631_v49  ;;  %v1770_v13 = vpop.permute.xlu1 %1769  ;;  %v3806_v27 = vpop.eup %2688  ;;  %2134 = vst.msk [vmem:[%s3273_s22 + $0x1f8] sm:$0xff] %vm460_vm1, %v3800_v43  ;;  %v1572_v49 = vsel %vm2919_vm0, 1.0, %v2685_v35  ;;  %2704 = vpow2.f32 %v1473_v51 }
 0x253   : > { %v1952_v40 = vadd.f32 %v1770_v13, %v1632_v61  ;;  %v2691_v3 = vpop.eup %2690  ;;  %2132 = vst.msk [vmem:[%s3273_s22 + $0x1e8] sm:$0xff] %vm460_vm1, %v3806_v27  ;;  %v2800_v61 = vld [vmem:[%s2917_s9 + $0x60] sm:$0xff]  ;;  %v2801_v13 = vld [vmem:[%s2917_s9 + $0x68] sm:$0xff]  ;;  %2706 = vpow2.f32 %v1483_v24 }
 0x254   : > { %2015 = vst.msk [vmem:[%s3664_s25 + $0x40] sm:$0xff] %vm460_vm1, %v1951_v11  ;;  %v2693_v60 = vpop.eup %2692  ;;  %v1635_v33 = vmul.f32 %v2800_v61, %v1571_v34  ;;  %v1636_v32 = vmul.f32 %v2801_v13, %v1572_v49  ;;  %v1577_v35 = vsel %vm2919_vm0, 1.0, %v2691_v3  ;;  %2708 = vpow2.f32 %v1485_v55  ;;  %v2803_v3 = vld [vmem:[%s2917_s9 + $0x98] sm:$0xff] }
 0x255   : > { %2016 = vst.msk [vmem:[%s3664_s25 + $0x48] sm:$0xff] %vm460_vm1, %v1952_v40  ;;  %v1780_v36 = vpop.permute.xlu0 %1779  ;;  %v2695_v54 = vpop.eup %2694  ;;  %v1578_v57 = vsel %vm2919_vm0, 1.0, %v2693_v60  ;;  %2710 = vpow2.f32 %v1479_v59  ;;  %v2806_v59 = vld [vmem:[%s2917_s9 + $0xb0] sm:$0xff] }
 0x256   : > { %v1957_v44 = vadd.f32 %v1780_v36, %v1637_v19  ;;  %v1782_v22 = vpop.permute.xlu1 %1781  ;;  %v2697_v19 = vpop.eup %2696  ;;  %v2802_v36 = vld [vmem:[%s2917_s9 + $0x90] sm:$0xff] }
 0x257   : > { %v1958_v0 = vadd.f32 %v1782_v22, %v1638_v62  ;;  %v1641_v10 = vmul.f32 %v2802_v36, %v1577_v35  ;;  %v1481_v62 = vmul.f32 1.442695, %v3462_v1  ;;  %v1575_v22 = vsel %vm2919_vm0, 1.0, %v2695_v54  ;;  %v2699_v56 = vpop.eup %2698 }
 0x258   : > { %2021 = vst.msk [vmem:[%s3664_s25 + $0x70] sm:$0xff] %vm460_vm1, %v1957_v44  ;;  %v1642_v44 = vmul.f32 %v2803_v3, %v1578_v57  ;;  %v2701_v24 = vpop.eup %2700  ;;  %v1491_v1 = vmul.f32 1.442695, %v3475_v7  ;;  %v1581_v54 = vsel %vm2919_vm0, 1.0, %v2699_v56 }
 0x259   : > { %2022 = vst.msk [vmem:[%s3664_s25 + $0x78] sm:$0xff] %vm460_vm1, %v1958_v0  ;;  %v1776_v11 = vpop.permute.xlu0 %1775  ;;  %v1576_v0 = vsel %vm2919_vm0, 1.0, %v2697_v19  ;;  %2712 = vpow2.f32 %v1481_v62  ;;  %v1582_v57 = vsel %vm2919_vm0, 1.0, %v2701_v24  ;;  %v1645_v36 = vmul.f32 %v2806_v59, %v1581_v54  ;;  %v2808_v24 = vld [vmem:[%s2917_s9 + $0xa0] sm:$0xff] }
 0x25a   : > { %v1955_v40 = vadd.f32 %v1776_v11, %v1635_v33  ;;  %v1778_v48 = vpop.permute.xlu1 %1777  ;;  %v2804_v33 = vld [vmem:[%s2917_s9 + $0x80] sm:$0xff]  ;;  %v1493_v11 = vmul.f32 1.442695, %v3485_v16  ;;  %2714 = vpow2.f32 %v1491_v1  ;;  %v1487_v16 = vmul.f32 1.442695, %v3478_v12 }
 0x25b   : > { %v1956_v51 = vadd.f32 %v1778_v48, %v1636_v32  ;;  %v1639_v55 = vmul.f32 %v2804_v33, %v1575_v22  ;;  %v2805_v32 = vld [vmem:[%s2917_s9 + $0x88] sm:$0xff]  ;;  %v2703_v7 = vpop.eup %2702  ;;  %v1501_v1 = vmul.f32 1.442695, %v3513_v39  ;;  %v1495_v39 = vmul.f32 1.442695, %v3508_v31 }
 0x25c   : > { %2019 = vst.msk [vmem:[%s3664_s25 + $0x60] sm:$0xff] %vm460_vm1, %v1955_v40  ;;  %v1640_v35 = vmul.f32 %v2805_v32, %v1576_v0  ;;  %v2705_v19 = vpop.eup %2704  ;;  %2716 = vpow2.f32 %v1493_v11 }
 0x25d   : > { %2020 = vst.msk [vmem:[%s3664_s25 + $0x68] sm:$0xff] %vm460_vm1, %v1956_v51  ;;  %v1788_v34 = vpop.permute.xlu0 %1787  ;;  %v2707_v12 = vpop.eup %2706  ;;  %2718 = vpow2.f32 %v1487_v16  ;;  %v2811_v16 = vld [vmem:[%s2917_s9 + $0xd8] sm:$0xff] }
 0x25e   : > { %v1961_v49 = vadd.f32 %v1788_v34, %v1641_v10  ;;  %v1790_v60 = vpop.permute.xlu1 %1789  ;;  %v1489_v10 = vmul.f32 1.442695, %v3490_v18  ;;  %v2807_v34 = vld [vmem:[%s2917_s9 + $0xb8] sm:$0xff]  ;;  %v1499_v18 = vmul.f32 1.442695, %v3504_v28 }
 0x25f   : > { %v1962_v61 = vadd.f32 %v1790_v60, %v1642_v44  ;;  %v1646_v3 = vmul.f32 %v2807_v34, %v1582_v57  ;;  %v1579_v44 = vsel %vm2919_vm0, 1.0, %v2703_v7  ;;  %v2709_v60 = vpop.eup %2708 }
 0x260   : > { %2025 = vst.msk [vmem:[%s3664_s25 + $0x90] sm:$0xff] %vm460_vm1, %v1961_v49  ;;  %v1580_v49 = vsel %vm2919_vm0, 1.0, %v2705_v19  ;;  %2720 = vpow2.f32 %v1489_v10  ;;  %v2711_v28 = vpop.eup %2710  ;;  %v1586_v54 = vsel %vm2919_vm0, 1.0, %v2709_v60  ;;  %v1497_v19 = vmul.f32 1.442695, %v3519_v45  ;;  %v2813_v60 = vld [vmem:[%s2917_s9 + $0xc8] sm:$0xff] }
 0x261   : > { %2026 = vst.msk [vmem:[%s3664_s25 + $0x98] sm:$0xff] %vm460_vm1, %v1962_v61  ;;  %v1784_v13 = vpop.permute.xlu0 %1783  ;;  %v1643_v61 = vmul.f32 %v2808_v24, %v1579_v44  ;;  %2722 = vpow2.f32 %v1499_v18  ;;  %v1650_v59 = vmul.f32 %v2811_v16, %v1586_v54  ;;  %v1507_v45 = vmul.f32 1.442695, %v3532_v53 }
 0x262   : > { %v1959_v40 = vadd.f32 %v1784_v13, %v1639_v55  ;;  %v1786_v48 = vpop.permute.xlu1 %1785  ;;  %v2809_v55 = vld [vmem:[%s2917_s9 + $0xa8] sm:$0xff]  ;;  %v1585_v13 = vsel %vm2919_vm0, 1.0, %v2707_v12  ;;  %2724 = vpow2.f32 %v1501_v1  ;;  %v2812_v12 = vld [vmem:[%s2917_s9 + $0xc0] sm:$0xff] }
 0x263   : > { %v1960_v51 = vadd.f32 %v1786_v48, %v1640_v35  ;;  %v1644_v11 = vmul.f32 %v2809_v55, %v1580_v49  ;;  %v2713_v7 = vpop.eup %2712  ;;  %v2810_v48 = vld [vmem:[%s2917_s9 + $0xd0] sm:$0xff]  ;;  %2726 = vpow2.f32 %v1495_v39 }
 0x264   : > { %2023 = vst.msk [vmem:[%s3664_s25 + $0x80] sm:$0xff] %vm460_vm1, %v1959_v40  ;;  %v1649_v57 = vmul.f32 %v2810_v48, %v1585_v13  ;;  %v2715_v31 = vpop.eup %2714  ;;  %v1584_v34 = vsel %vm2919_vm0, 1.0, %v2713_v7  ;;  %2728 = vpow2.f32 %v1497_v19 }
 0x265   : > { %2024 = vst.msk [vmem:[%s3664_s25 + $0x88] sm:$0xff] %vm460_vm1, %v1960_v51  ;;  %v1796_v62 = vpop.permute.xlu0 %1795  ;;  %v1589_v18 = vsel %vm2919_vm0, 1.0, %v2715_v31  ;;  %2730 = vpow2.f32 %v1507_v45  ;;  %v2817_v31 = vld [vmem:[%s2917_s9 + $0xe8] sm:$0xff] }
 0x266   : > { %v1965_v22 = vadd.f32 %v1796_v62, %v1645_v36  ;;  %v1798_v56 = vpop.permute.xlu1 %1797  ;;  %v1583_v36 = vsel %vm2919_vm0, 1.0, %v2711_v28  ;;  %v1505_v28 = vmul.f32 1.442695, %v3547_v5  ;;  %v1515_v5 = vmul.f32 1.442695, %v3554_v14 }
 0x267   : > { %v1966_v0 = vadd.f32 %v1798_v56, %v1646_v3  ;;  %v2717_v3 = vpop.eup %2716  ;;  %v1509_v56 = vmul.f32 1.442695, %v3541_v2  ;;  %v1503_v2 = vmul.f32 1.442695, %v3536_v58 }
 0x268   : > { %2029 = vst.msk [vmem:[%s3664_s25 + $0xb0] sm:$0xff] %vm460_vm1, %v1965_v22  ;;  %v1647_v22 = vmul.f32 %v2812_v12, %v1583_v36  ;;  %v2719_v53 = vpop.eup %2718  ;;  %v1590_v1 = vsel %vm2919_vm0, 1.0, %v2717_v3 }
 0x269   : > { %2030 = vst.msk [vmem:[%s3664_s25 + $0xb8] sm:$0xff] %vm460_vm1, %v1966_v0  ;;  %v1792_v33 = vpop.permute.xlu0 %1791  ;;  %v1648_v0 = vmul.f32 %v2813_v60, %v1584_v34  ;;  %2732 = vpow2.f32 %v1509_v56  ;;  %v1587_v7 = vsel %vm2919_vm0, 1.0, %v2719_v53 }
 0x26a   : > { %v1963_v32 = vadd.f32 %v1792_v33, %v1643_v61  ;;  %v1794_v35 = vpop.permute.xlu1 %1793  ;;  %v2721_v33 = vpop.eup %2720  ;;  %2734 = vpow2.f32 %v1503_v2  ;;  %v2820_v2 = vld [vmem:[%s2917_s9 + $0x100] sm:$0xff] }
 0x26b   : > { %v1964_v40 = vadd.f32 %v1794_v35, %v1644_v11  ;;  %v2814_v11 = vld [vmem:[%s2917_s9 + $0xf0] sm:$0xff]  ;;  %v2815_v35 = vld [vmem:[%s2917_s9 + $0xf8] sm:$0xff]  ;;  %v2723_v58 = vpop.eup %2722  ;;  %v1588_v48 = vsel %vm2919_vm0, 1.0, %v2721_v33  ;;  %2736 = vpow2.f32 %v1505_v28 }
 0x26c   : > { %2027 = vst.msk [vmem:[%s3664_s25 + $0xa0] sm:$0xff] %vm460_vm1, %v1963_v32  ;;  %v1653_v13 = vmul.f32 %v2814_v11, %v1589_v18  ;;  %v1654_v54 = vmul.f32 %v2815_v35, %v1590_v1  ;;  %2738 = vpow2.f32 %v1515_v5  ;;  %v1521_v5 = vmul.f32 1.442695, %v3613_v50 }
 0x26d   : > { %2028 = vst.msk [vmem:[%s3664_s25 + $0xa8] sm:$0xff] %vm460_vm1, %v1964_v40  ;;  %v1804_v51 = vpop.permute.xlu0 %1803  ;;  %v1531_v50 = vmul.f32 1.442695, %v3620_v23 }
 0x26e   : > { %v1969_v10 = vadd.f32 %v1804_v51, %v1649_v57  ;;  %v1806_v62 = vpop.permute.xlu1 %1805  ;;  %v2725_v57 = vpop.eup %2724  ;;  %v2816_v51 = vld [vmem:[%s2917_s9 + $0xe0] sm:$0xff] }
 0x26f   : > { %v1970_v44 = vadd.f32 %v1806_v62, %v1650_v59  ;;  %v1651_v16 = vmul.f32 %v2816_v51, %v1587_v7  ;;  %v1517_v59 = vmul.f32 1.442695, %v3572_v30  ;;  %v1593_v62 = vsel %vm2919_vm0, 1.0, %v2723_v58  ;;  %v2727_v14 = vpop.eup %2726 }
 0x270   : > { %2033 = vst.msk [vmem:[%s3664_s25 + $0xd0] sm:$0xff] %vm460_vm1, %v1969_v10  ;;  %v1652_v10 = vmul.f32 %v2817_v31, %v1588_v48  ;;  %v2729_v45 = vpop.eup %2728  ;;  %v1511_v30 = vmul.f32 1.442695, %v3569_v25  ;;  %v1591_v53 = vsel %vm2919_vm0, 1.0, %v2727_v14 }
 0x271   : > { %2034 = vst.msk [vmem:[%s3664_s25 + $0xd8] sm:$0xff] %vm460_vm1, %v1970_v44  ;;  %v1800_v49 = vpop.permute.xlu0 %1799  ;;  %v1594_v44 = vsel %vm2919_vm0, 1.0, %v2725_v57  ;;  %2740 = vpow2.f32 %v1517_v59  ;;  %v2731_v25 = vpop.eup %2730  ;;  %v1592_v1 = vsel %vm2919_vm0, 1.0, %v2729_v45  ;;  %v1655_v11 = vmul.f32 %v2820_v2, %v1591_v53  ;;  %v2822_v57 = vld [vmem:[%s2917_s9 + $0x130] sm:$0xff] }
 0x272   : > { %v1967_v24 = vadd.f32 %v1800_v49, %v1647_v22  ;;  %v1802_v61 = vpop.permute.xlu1 %1801  ;;  %v2818_v22 = vld [vmem:[%s2917_s9 + $0x110] sm:$0xff]  ;;  %v1513_v49 = vmul.f32 1.442695, %v3579_v42  ;;  %2742 = vpow2.f32 %v1511_v30  ;;  %v1523_v42 = vmul.f32 1.442695, %v3586_v37  ;;  %v2825_v30 = vld [vmem:[%s2917_s9 + $0x128] sm:$0xff] }
 0x273   : > { %v1968_v55 = vadd.f32 %v1802_v61, %v1648_v0  ;;  %v1657_v56 = vmul.f32 %v2818_v22, %v1593_v62  ;;  %v2819_v0 = vld [vmem:[%s2917_s9 + $0x118] sm:$0xff]  ;;  %v2733_v33 = vpop.eup %2732  ;;  %v1533_v45 = vmul.f32 1.442695, %v3646_v15  ;;  %v1527_v15 = vmul.f32 1.442695, %v3642_v63 }
 0x274   : > { %2031 = vst.msk [vmem:[%s3664_s25 + $0xc0] sm:$0xff] %vm460_vm1, %v1967_v24  ;;  %v1658_v18 = vmul.f32 %v2819_v0, %v1594_v44  ;;  %2744 = vpow2.f32 %v1513_v49  ;;  %v2735_v37 = vpop.eup %2734 }
 0x275   : > { %2032 = vst.msk [vmem:[%s3664_s25 + $0xc8] sm:$0xff] %vm460_vm1, %v1968_v55  ;;  %v1812_v32 = vpop.permute.xlu0 %1811  ;;  %2746 = vpow2.f32 %v1523_v42 }
 0x276   : > { %v1973_v40 = vadd.f32 %v1812_v32, %v1653_v13  ;;  %v1814_v39 = vpop.permute.xlu1 %1813  ;;  %v1525_v13 = vmul.f32 1.442695, %v3606_v20  ;;  %v2821_v32 = vld [vmem:[%s2917_s9 + $0x108] sm:$0xff]  ;;  %v1519_v20 = vmul.f32 1.442695, %v3602_v8 }
 0x277   : > { %v1974_v19 = vadd.f32 %v1814_v39, %v1654_v54  ;;  %v1656_v35 = vmul.f32 %v2821_v32, %v1592_v1  ;;  %v1597_v54 = vsel %vm2919_vm0, 1.0, %v2731_v25  ;;  %v2737_v39 = vpop.eup %2736  ;;  %v2826_v25 = vld [vmem:[%s2917_s9 + $0x150] sm:$0xff] }
 0x278   : > { %2037 = vst.msk [vmem:[%s3664_s25 + $0xf0] sm:$0xff] %vm460_vm1, %v1973_v40  ;;  %v1598_v40 = vsel %vm2919_vm0, 1.0, %v2733_v33  ;;  %2748 = vpow2.f32 %v1525_v13  ;;  %v2739_v8 = vpop.eup %2738  ;;  %v1596_v62 = vsel %vm2919_vm0, 1.0, %v2737_v39  ;;  %v2827_v33 = vld [vmem:[%s2917_s9 + $0x158] sm:$0xff] }
 0x279   : > { %2038 = vst.msk [vmem:[%s3664_s25 + $0xf8] sm:$0xff] %vm460_vm1, %v1974_v19  ;;  %v1808_v36 = vpop.permute.xlu0 %1807  ;;  %v1661_v19 = vmul.f32 %v2822_v57, %v1597_v54  ;;  %2750 = vpow2.f32 %v1519_v20  ;;  %v1660_v22 = vmul.f32 %v2825_v30, %v1596_v62 }
 0x27a   : > { %v1971_v34 = vadd.f32 %v1808_v36, %v1651_v16  ;;  %v1810_v3 = vpop.permute.xlu1 %1809  ;;  %v2823_v16 = vld [vmem:[%s2917_s9 + $0x138] sm:$0xff]  ;;  %v1595_v36 = vsel %vm2919_vm0, 1.0, %v2735_v37  ;;  %2752 = vpow2.f32 %v1521_v5  ;;  %v1541_v37 = vmul.f32 1.442695, %v3705_v46 }
 0x27b   : > { %v1972_v12 = vadd.f32 %v1810_v3, %v1652_v10  ;;  %v1662_v59 = vmul.f32 %v2823_v16, %v1598_v40  ;;  %v2741_v14 = vpop.eup %2740  ;;  %v2824_v3 = vld [vmem:[%s2917_s9 + $0x120] sm:$0xff]  ;;  %2754 = vpow2.f32 %v1531_v50  ;;  %v1535_v46 = vmul.f32 1.442695, %v3679_v52 }
 0x27c   : > { %2035 = vst.msk [vmem:[%s3664_s25 + $0xe0] sm:$0xff] %vm460_vm1, %v1971_v34  ;;  %v1659_v44 = vmul.f32 %v2824_v3, %v1595_v36  ;;  %v2743_v23 = vpop.eup %2742  ;;  %v1602_v0 = vsel %vm2919_vm0, 1.0, %v2741_v14  ;;  %2756 = vpow2.f32 %v1533_v45 }
 0x27d   : > { %2036 = vst.msk [vmem:[%s3664_s25 + $0xe8] sm:$0xff] %vm460_vm1, %v1972_v12  ;;  %v1820_v60 = vpop.permute.xlu0 %1819  ;;  %v1599_v42 = vsel %vm2919_vm0, 1.0, %v2743_v23  ;;  %2758 = vpow2.f32 %v1527_v15  ;;  %v2834_v15 = vld [vmem:[%s2917_s9 + $0x190] sm:$0xff] }
 0x27e   : > { %v1977_v24 = vadd.f32 %v1820_v60, %v1657_v56  ;;  %v1822_v61 = vpop.permute.xlu1 %1821  ;;  %v1601_v56 = vsel %vm2919_vm0, 1.0, %v2739_v8  ;;  %v2831_v8 = vld [vmem:[%s2917_s9 + $0x178] sm:$0xff] }
 0x27f   : > { %v1978_v55 = vadd.f32 %v1822_v61, %v1658_v18  ;;  %v2745_v18 = vpop.eup %2744  ;;  %v1529_v61 = vmul.f32 1.442695, %v3654_v21  ;;  %v1539_v21 = vmul.f32 1.442695, %v3670_v9 }
 0x280   : > { %2041 = vst.msk [vmem:[%s3664_s25 + $0x110] sm:$0xff] %vm460_vm1, %v1977_v24  ;;  %v1665_v24 = vmul.f32 %v2826_v25, %v1601_v56  ;;  %v2747_v63 = vpop.eup %2746  ;;  %v1600_v13 = vsel %vm2919_vm0, 1.0, %v2745_v18 }
 0x281   : > { %2042 = vst.msk [vmem:[%s3664_s25 + $0x118] sm:$0xff] %vm460_vm1, %v1978_v55  ;;  %v1816_v28 = vpop.permute.xlu0 %1815  ;;  %v1666_v55 = vmul.f32 %v2827_v33, %v1602_v0  ;;  %2760 = vpow2.f32 %v1529_v61  ;;  %v1605_v39 = vsel %vm2919_vm0, 1.0, %v2747_v63 }
 0x282   : > { %v1975_v7 = vadd.f32 %v1816_v28, %v1655_v11  ;;  %v1818_v58 = vpop.permute.xlu1 %1817  ;;  %v2749_v28 = vpop.eup %2748  ;;  %2762 = vpow2.f32 %v1539_v21 }
 0x283   : > { %v1976_v48 = vadd.f32 %v1818_v58, %v1656_v35  ;;  %v2828_v35 = vld [vmem:[%s2917_s9 + $0x140] sm:$0xff]  ;;  %v2829_v58 = vld [vmem:[%s2917_s9 + $0x148] sm:$0xff]  ;;  %v2751_v9 = vpop.eup %2750  ;;  %v1606_v57 = vsel %vm2919_vm0, 1.0, %v2749_v28  ;;  %2764 = vpow2.f32 %v1541_v37 }
 0x284   : > { %2039 = vst.msk [vmem:[%s3664_s25 + $0x100] sm:$0xff] %vm460_vm1, %v1975_v7  ;;  %v1663_v54 = vmul.f32 %v2828_v35, %v1599_v42  ;;  %v1664_v40 = vmul.f32 %v2829_v58, %v1600_v13  ;;  %2766 = vpow2.f32 %v1535_v46  ;;  %v2836_v28 = vld [vmem:[%s2917_s9 + $0x180] sm:$0xff]  ;;  %v2837_v35 = vld [vmem:[%s2917_s9 + $0x188] sm:$0xff] }
 0x285   : > { %2040 = vst.msk [vmem:[%s3664_s25 + $0x108] sm:$0xff] %vm460_vm1, %v1976_v48  ;;  %v1828_v51 = vpop.permute.xlu0 %1827 }
 0x286   : > { %v1981_v31 = vadd.f32 %v1828_v51, %v1661_v19  ;;  %v1830_v10 = vpop.permute.xlu1 %1829  ;;  %v2753_v19 = vpop.eup %2752  ;;  %v2830_v51 = vld [vmem:[%s2917_s9 + $0x170] sm:$0xff] }
 0x287   : > { %v1982_v34 = vadd.f32 %v1830_v10, %v1662_v59  ;;  %v1669_v16 = vmul.f32 %v2830_v51, %v1605_v39  ;;  %v1537_v59 = vmul.f32 1.442695, %v3711_v38  ;;  %v1603_v10 = vsel %vm2919_vm0, 1.0, %v2751_v9  ;;  %v2755_v52 = vpop.eup %2754 }
 0x288   : > { %2045 = vst.msk [vmem:[%s3664_s25 + $0x130] sm:$0xff] %vm460_vm1, %v1981_v31  ;;  %v1670_v31 = vmul.f32 %v2831_v8, %v1606_v57  ;;  %v2757_v50 = vpop.eup %2756  ;;  %v1547_v38 = vmul.f32 1.442695, %v3720_v17  ;;  %v1609_v23 = vsel %vm2919_vm0, 1.0, %v2755_v52  ;;  %v2838_v57 = vld [vmem:[%s2917_s9 + $0x1b0] sm:$0xff]  ;;  %v2840_v52 = vld [vmem:[%s2917_s9 + $0x1a0] sm:$0xff] }
 0x289   : > { %2046 = vst.msk [vmem:[%s3664_s25 + $0x138] sm:$0xff] %vm460_vm1, %v1982_v34  ;;  %v1824_v12 = vpop.permute.xlu0 %1823  ;;  %v1604_v34 = vsel %vm2919_vm0, 1.0, %v2753_v19  ;;  %2768 = vpow2.f32 %v1537_v59  ;;  %v2759_v17 = vpop.eup %2758  ;;  %v1610_v0 = vsel %vm2919_vm0, 1.0, %v2757_v50  ;;  %v1673_v25 = vmul.f32 %v2834_v15, %v1609_v23 }
 0x28a   : > { %v1979_v49 = vadd.f32 %v1824_v12, %v1659_v44  ;;  %v1826_v60 = vpop.permute.xlu1 %1825  ;;  %v2832_v44 = vld [vmem:[%s2917_s9 + $0x160] sm:$0xff]  ;;  %v1549_v12 = vmul.f32 1.442695, %v3756_v47  ;;  %2770 = vpow2.f32 %v1547_v38  ;;  %v1543_v47 = vmul.f32 1.442695, %v3730_v41 }
 0x28b   : > { %v1980_v53 = vadd.f32 %v1826_v60, %v1660_v22  ;;  %v1667_v45 = vmul.f32 %v2832_v44, %v1603_v10  ;;  %v2833_v22 = vld [vmem:[%s2917_s9 + $0x168] sm:$0xff]  ;;  %v2761_v18 = vpop.eup %2760 }
 0x28c   : > { %2043 = vst.msk [vmem:[%s3664_s25 + $0x120] sm:$0xff] %vm460_vm1, %v1979_v49  ;;  %v1668_v56 = vmul.f32 %v2833_v22, %v1604_v34  ;;  %2772 = vpow2.f32 %v1549_v12  ;;  %v2763_v41 = vpop.eup %2762  ;;  %v2842_v22 = vld [vmem:[%s2917_s9 + $0x1d0] sm:$0xff] }
 0x28d   : > { %2044 = vst.msk [vmem:[%s3664_s25 + $0x128] sm:$0xff] %vm460_vm1, %v1980_v53  ;;  %v1836_v1 = vpop.permute.xlu0 %1835  ;;  %2774 = vpow2.f32 %v1543_v47  ;;  %v1613_v37 = vsel %vm2919_vm0, 1.0, %v2763_v41 }
 0x28e   : > { %v1985_v2 = vadd.f32 %v1836_v1, %v1665_v24  ;;  %v1838_v11 = vpop.permute.xlu1 %1837  ;;  %v1545_v24 = vmul.f32 1.442695, %v3762_v29  ;;  %v2835_v1 = vld [vmem:[%s2917_s9 + $0x198] sm:$0xff]  ;;  %v1551_v29 = vmul.f32 1.442695, %v3780_v4  ;;  %v1677_v19 = vmul.f32 %v2838_v57, %v1613_v37  ;;  %v2847_v37 = vld [vmem:[%s2917_s9 + $0x1e8] sm:$0xff] }
 0x28f   : > { %v1986_v32 = vadd.f32 %v1838_v11, %v1666_v55  ;;  %v1674_v33 = vmul.f32 %v2835_v1, %v1610_v0  ;;  %v1607_v55 = vsel %vm2919_vm0, 1.0, %v2759_v17  ;;  %v2765_v11 = vpop.eup %2764  ;;  %v1553_v4 = vmul.f32 1.442695, %v3806_v27  ;;  %v2839_v27 = vld [vmem:[%s2917_s9 + $0x1b8] sm:$0xff] }
 0x290   : > { %2049 = vst.msk [vmem:[%s3664_s25 + $0x150] sm:$0xff] %vm460_vm1, %v1985_v2  ;;  %v1608_v2 = vsel %vm2919_vm0, 1.0, %v2761_v18  ;;  %2776 = vpow2.f32 %v1545_v24  ;;  %v1614_v39 = vsel %vm2919_vm0, 1.0, %v2765_v11  ;;  %v2843_v17 = vld [vmem:[%s2917_s9 + $0x1d8] sm:$0xff]  ;;  %v2844_v24 = vld [vmem:[%s2917_s9 + $0x1c0] sm:$0xff] }
 0x291   : > { %2050 = vst.msk [vmem:[%s3664_s25 + $0x158] sm:$0xff] %vm460_vm1, %v1986_v32  ;;  %v1832_v7 = vpop.permute.xlu0 %1831  ;;  %v1671_v32 = vmul.f32 %v2836_v28, %v1607_v55  ;;  %2778 = vpow2.f32 %v1551_v29  ;;  %v1678_v46 = vmul.f32 %v2839_v27, %v1614_v39  ;;  %v2846_v28 = vld [vmem:[%s2917_s9 + $0x1e0] sm:$0xff]  ;;  %v2848_v39 = vld [vmem:[%s2917_s9 + $0x1f0] sm:$0xff]  ;;  %v2849_v57 = vld [vmem:[%s2917_s9 + $0x1f8] sm:$0xff] }
 0x292   : > { %v1983_v48 = vadd.f32 %v1832_v7, %v1663_v54  ;;  %v1834_v20 = vpop.permute.xlu1 %1833  ;;  %v1672_v54 = vmul.f32 %v2837_v35, %v1608_v2  ;;  %v2767_v7 = vpop.eup %2766  ;;  %2780 = vpow2.f32 %v1553_v4 }
 0x293   : > { %v1984_v5 = vadd.f32 %v1834_v20, %v1664_v40  ;;  %v2769_v9 = vpop.eup %2768  ;;  %v1555_v20 = vmul.f32 1.442695, %v3773_v26  ;;  %v1611_v51 = vsel %vm2919_vm0, 1.0, %v2767_v7  ;;  %v1557_v26 = vmul.f32 1.442695, %v3800_v43  ;;  %v2841_v43 = vld [vmem:[%s2917_s9 + $0x1a8] sm:$0xff] }
 0x294   : > { %2047 = vst.msk [vmem:[%s3664_s25 + $0x140] sm:$0xff] %vm460_vm1, %v1983_v48  ;;  %v1612_v8 = vsel %vm2919_vm0, 1.0, %v2769_v9 }
 0x295   : > { %2048 = vst.msk [vmem:[%s3664_s25 + $0x148] sm:$0xff] %vm460_vm1, %v1984_v5  ;;  %v1844_v36 = vpop.permute.xlu0 %1843  ;;  %2782 = vpow2.f32 %v1555_v20  ;;  %v1676_v34 = vmul.f32 %v2841_v43, %v1612_v8 }
 0x296   : > { %v1989_v62 = vadd.f32 %v1844_v36, %v1669_v16  ;;  %v1846_v14 = vpop.permute.xlu1 %1845  ;;  %v2771_v16 = vpop.eup %2770  ;;  %2784 = vpow2.f32 %v1557_v26 }
 0x297   : > { %v1990_v3 = vadd.f32 %v1846_v14, %v1670_v31  ;;  %v2773_v31 = vpop.eup %2772  ;;  %v1617_v50 = vsel %vm2919_vm0, 1.0, %v2771_v16 }
 0x298   : > { %2053 = vst.msk [vmem:[%s3664_s25 + $0x170] sm:$0xff] %vm460_vm1, %v1989_v62  ;;  %v1675_v62 = vmul.f32 %v2840_v52, %v1611_v51 }
 0x299   : > { %2054 = vst.msk [vmem:[%s3664_s25 + $0x178] sm:$0xff] %vm460_vm1, %v1990_v3  ;;  %v1840_v30 = vpop.permute.xlu0 %1839  ;;  %v2775_v3 = vpop.eup %2774 }
 0x29a   : > { %v1987_v49 = vadd.f32 %v1840_v30, %v1667_v45  ;;  %v1842_v60 = vpop.permute.xlu1 %1841  ;;  %v1618_v45 = vsel %vm2919_vm0, 1.0, %v2773_v31  ;;  %v2777_v12 = vpop.eup %2776 }
 0x29b   : > { %v1988_v53 = vadd.f32 %v1842_v60, %v1668_v56  ;;  %v1681_v56 = vmul.f32 %v2842_v22, %v1617_v50  ;;  %v1615_v60 = vsel %vm2919_vm0, 1.0, %v2775_v3  ;;  %v2779_v0 = vpop.eup %2778  ;;  %v1616_v47 = vsel %vm2919_vm0, 1.0, %v2777_v12 }
 0x29c   : > { %2051 = vst.msk [vmem:[%s3664_s25 + $0x160] sm:$0xff] %vm460_vm1, %v1987_v49  ;;  %v1682_v49 = vmul.f32 %v2843_v17, %v1618_v45  ;;  %v1619_v41 = vsel %vm2919_vm0, 1.0, %v2779_v0 }
 0x29d   : > { %2052 = vst.msk [vmem:[%s3664_s25 + $0x168] sm:$0xff] %vm460_vm1, %v1988_v53  ;;  %v1852_v61 = vpop.permute.xlu0 %1851 }
 0x29e   : > { %v1993_v42 = vadd.f32 %v1852_v61, %v1673_v25  ;;  %v1854_v63 = vpop.permute.xlu1 %1853  ;;  %v2781_v25 = vpop.eup %2780  ;;  %v1679_v61 = vmul.f32 %v2844_v24, %v1615_v60 }
 0x29f   : > { %v1994_v13 = vadd.f32 %v1854_v63, %v1674_v33  ;;  %v2845_v33 = vld [vmem:[%s2917_s9 + $0x1c8] sm:$0xff] }
 0x2a0   : > { %2057 = vst.msk [vmem:[%s3664_s25 + $0x190] sm:$0xff] %vm460_vm1, %v1993_v42  ;;  %v1680_v55 = vmul.f32 %v2845_v33, %v1616_v47  ;;  %v2783_v42 = vpop.eup %2782 }
 0x2a1   : > { %2058 = vst.msk [vmem:[%s3664_s25 + $0x198] sm:$0xff] %vm460_vm1, %v1994_v13  ;;  %v1848_v21 = vpop.permute.xlu0 %1847  ;;  %v1620_v13 = vsel %vm2919_vm0, 1.0, %v2781_v25  ;;  %v2785_v29 = vpop.eup %2784  ;;  %v1621_v35 = vsel %vm2919_vm0, 1.0, %v2783_v42 }
 0x2a2   : > { %v1991_v58 = vadd.f32 %v1848_v21, %v1671_v32  ;;  %v1850_v40 = vpop.permute.xlu1 %1849  ;;  %v1683_v32 = vmul.f32 %v2846_v28, %v1619_v41  ;;  %v1684_v7 = vmul.f32 %v2847_v37, %v1620_v13  ;;  %v1685_v9 = vmul.f32 %v2848_v39, %v1621_v35 }
 0x2a3   : > { %v1992_v48 = vadd.f32 %v1850_v40, %v1672_v54 }
 0x2a4   : > { %2055 = vst.msk [vmem:[%s3664_s25 + $0x180] sm:$0xff] %vm460_vm1, %v1991_v58  ;;  %v1622_v58 = vsel %vm2919_vm0, 1.0, %v2785_v29 }
 0x2a5   : > { %2056 = vst.msk [vmem:[%s3664_s25 + $0x188] sm:$0xff] %vm460_vm1, %v1992_v48  ;;  %v1860_v5 = vpop.permute.xlu0 %1859 }
 0x2a6   : > { %v1997_v59 = vadd.f32 %v1860_v5, %v1677_v19  ;;  %v1862_v36 = vpop.permute.xlu1 %1861  ;;  %v1686_v19 = vmul.f32 %v2849_v57, %v1622_v58 }
 0x2a7   : > { %v1998_v10 = vadd.f32 %v1862_v36, %v1678_v46 }
 0x2a8   : > { %2061 = vst.msk [vmem:[%s3664_s25 + $0x1b0] sm:$0xff] %vm460_vm1, %v1997_v59 }
 0x2a9   : > { %2062 = vst.msk [vmem:[%s3664_s25 + $0x1b8] sm:$0xff] %vm460_vm1, %v1998_v10  ;;  %v1856_v14 = vpop.permute.xlu0 %1855 }
 0x2aa   : > { %v1995_v38 = vadd.f32 %v1856_v14, %v1675_v62  ;;  %v1858_v44 = vpop.permute.xlu1 %1857 }
 0x2ab   : > { %v1996_v30 = vadd.f32 %v1858_v44, %v1676_v34 }
 0x2ac   : > { %2059 = vst.msk [vmem:[%s3664_s25 + $0x1a0] sm:$0xff] %vm460_vm1, %v1995_v38 }
 0x2ad   : > { %2060 = vst.msk [vmem:[%s3664_s25 + $0x1a8] sm:$0xff] %vm460_vm1, %v1996_v30  ;;  %v1868_v23 = vpop.permute.xlu0 %1867 }
 0x2ae   : > { %v2001_v18 = vadd.f32 %v1868_v23, %v1681_v56  ;;  %v1870_v53 = vpop.permute.xlu1 %1869 }
 0x2af   : > { %v2002_v15 = vadd.f32 %v1870_v53, %v1682_v49 }
 0x2b0   : > { %2065 = vst.msk [vmem:[%s3664_s25 + $0x1d0] sm:$0xff] %vm460_vm1, %v2001_v18 }
 0x2b1   : > { %2066 = vst.msk [vmem:[%s3664_s25 + $0x1d8] sm:$0xff] %vm460_vm1, %v2002_v15  ;;  %v1864_v1 = vpop.permute.xlu0 %1863 }
 0x2b2   : > { %v1999_v63 = vadd.f32 %v1864_v1, %v1679_v61  ;;  %v1866_v2 = vpop.permute.xlu1 %1865 }
 0x2b3   : > { %v2000_v11 = vadd.f32 %v1866_v2, %v1680_v55 }
 0x2b4   : > { %2063 = vst.msk [vmem:[%s3664_s25 + $0x1c0] sm:$0xff] %vm460_vm1, %v1999_v63 }
 0x2b5   : > { %2064 = vst.msk [vmem:[%s3664_s25 + $0x1c8] sm:$0xff] %vm460_vm1, %v2000_v11  ;;  %v1872_v21 = vpop.permute.xlu0 %1871 }
 0x2b6   : > { %v2003_v54 = vadd.f32 %v1872_v21, %v1683_v32 }
 0x2b7   : > { %v1874_v4 = vpop.permute.xlu1 %1873 }
 0x2b8   : > { %2067 = vst.msk [vmem:[%s3664_s25 + $0x1e0] sm:$0xff] %vm460_vm1, %v2003_v54  ;;  %v2004_v40 = vadd.f32 %v1874_v4, %v1684_v7 }
 0x2b9   : > { %v1876_v48 = vpop.permute.xlu0 %1875 }
 0x2ba   : > { %2068 = vst.msk [vmem:[%s3664_s25 + $0x1e8] sm:$0xff] %vm460_vm1, %v2004_v40  ;;  %v2005_v20 = vadd.f32 %v1876_v48, %v1685_v9 }
 0x2bb   : > { %v1878_v5 = vpop.permute.xlu1 %1877 }
 0x2bc   : > { %2069 = vst.msk [vmem:[%s3664_s25 + $0x1f0] sm:$0xff] %vm460_vm1, %v2005_v20  ;;  %v2006_v27 = vadd.f32 %v1878_v5, %v1686_v19 }
 0x2be   : > { %2070 = vst.msk [vmem:[%s3664_s25 + $0x1f8] sm:$0xff] %vm460_vm1, %v2006_v27 }
 0x2bf PF: > { %s17_s21 = sadd.s32 1, %s2856_s21  }
 0x2c0   : > { %p14_p4 = scmp.ge.s32.totalorder %s17_s21, 4  }
 0x2c2   :  { %16 = sbr.rel (!%p14_p4) target bundleno = 1 (0x1), region = 82 }

</bundles_post_ra>
